<compile_context>
chip_gen: v7x
topology: tpu7x:2x2x1
jax: 0.10.0
libtpu: 0.0.40
codegen_flags: <defaults>
</compile_context>

<pallas_src>
import functools

import jax
import jax.numpy as jnp
from jax.experimental import pallas as pl
from jax.experimental.pallas import tpu as pltpu


# ----------------------------------------------------------------------------
# Kernels
# ----------------------------------------------------------------------------
def _ffn_kernel_acc_in_out(x_ref, w13_ref, w2_ref, o_ref):
    """Output dtype is f32: accumulate directly into the resident output block."""
    j = pl.program_id(1)

    @pl.when(j == 0)
    def _():
        o_ref[...] = jnp.zeros_like(o_ref)

    x = x_ref[...]                                # (tm, dim)   bf16
    w13 = w13_ref[...]                            # (dim, 2*tn) bf16
    tn = w13.shape[1] // 2                        # static

    # Fused W1/W3 matmul on the MXU (standard (K,N) contraction, f32 acc).
    h = jnp.dot(x, w13, preferred_element_type=jnp.float32)   # (tm, 2*tn)
    h1 = h[:, :tn]
    h3 = h[:, tn:]

    # SwiGLU gate in f32 on the VPU/EUP.
    g = (h1 * jax.nn.sigmoid(h1)) * h3

    # Second matmul: g @ W2_j^T, accumulated over hidden tiles.
    o_ref[...] += jnp.dot(g.astype(w2_ref.dtype), w2_ref[...],
                          preferred_element_type=jnp.float32)


def _ffn_kernel_scratch(x_ref, w13_ref, w2_ref, o_ref, acc_ref):
    """Output dtype != f32: accumulate in an f32 scratch, cast on the last step."""
    j = pl.program_id(1)

    @pl.when(j == 0)
    def _():
        acc_ref[...] = jnp.zeros_like(acc_ref)

    x = x_ref[...]
    w13 = w13_ref[...]
    tn = w13.shape[1] // 2

    h = jnp.dot(x, w13, preferred_element_type=jnp.float32)
    h1 = h[:, :tn]
    h3 = h[:, tn:]
    g = (h1 * jax.nn.sigmoid(h1)) * h3

    acc_ref[...] += jnp.dot(g.astype(w2_ref.dtype), w2_ref[...],
                            preferred_element_type=jnp.float32)

    @pl.when(j == pl.num_programs(1) - 1)
    def _():
        o_ref[...] = acc_ref[...].astype(o_ref.dtype)


# ----------------------------------------------------------------------------
# Host-side helpers
# ----------------------------------------------------------------------------
def _round_up(x, m):
    return ((x + m - 1) // m) * m


def _vmem_budget_bytes():
    """VMEM capacity with headroom for Mosaic internal scratch."""
    cap = 64 * 1024 * 1024  # conservative fallback (v7x per-TC VMEM)
    try:
        info_fn = getattr(pltpu, "get_tpu_info", None)
        if info_fn is not None:
            cap = int(info_fn().vmem_capacity_bytes)
    except Exception:  # pragma: no cover - hardware query is best-effort
        pass
    return min(100 * 1024 * 1024, int(cap * 0.85))


def _choose_tiles(M, dim, hidden, out_itemsize, tm, tn, use_scratch, budget):
    if tn is None:
        for cand in (512, 256, 128):
            if hidden % cand == 0:
                tn = cand
                break
        else:
            tn = hidden  # single ragged-free hidden tile
    if tm is None:
        tm = 512
    # No point tiling tokens past the padded token count.
    tm = max(16, min(tm, max(256, _round_up(M, 256))))

    def vmem_bytes(tm_, tn_):
        b = 2 * tm_ * dim * 2                 # x blocks (bf16, double-buffered)
        b += 2 * dim * (2 * tn_) * 2          # fused w13 blocks
        b += 2 * tn_ * dim * 2                # w2 blocks
        b += 2 * tm_ * dim * out_itemsize     # output blocks
        if use_scratch:
            b += tm_ * dim * 4                # f32 accumulator scratch
        return b

    while vmem_bytes(tm, tn) > budget and tm > 256:
        tm //= 2
    while vmem_bytes(tm, tn) > budget and tn > 128 and hidden % (tn // 2) == 0:
        tn //= 2
    return tm, tn


def prepare_ffn_weights(w1, w2, w3, *, tn, dtype=jnp.bfloat16):
    """One-time weight preparation (hoist out of the per-token hot path).

    w1, w3: (hidden, dim); w2: (dim, hidden) -- PyTorch nn.Linear layout.
    Returns:
      w13: (h_tiles, dim, 2*tn) -- columns [:, :, :tn] are W1_j^T, [:, :, tn:]
           are W3_j^T; each tile is one contiguous (K, N)-oriented HBM slab.
      w2t: (h_tiles, tn, dim)   -- W2^T rows for hidden tile j.
    """
    hidden, dim = w1.shape
    assert w3.shape == (hidden, dim) and w2.shape == (dim, hidden)
    assert tn % 128 == 0, "hidden tile must be lane-aligned (multiple of 128)"
    assert hidden % tn == 0, "hidden must be divisible by the hidden tile tn"
    nh = hidden // tn
    w1t = w1.reshape(nh, tn, dim).transpose(0, 2, 1)          # (nh, dim, tn)
    w3t = w3.reshape(nh, tn, dim).transpose(0, 2, 1)          # (nh, dim, tn)
    w13 = jnp.concatenate([w1t, w3t], axis=-1).astype(dtype)  # (nh, dim, 2tn)
    w2t = w2.T.reshape(nh, tn, dim).astype(dtype)             # (nh, tn, dim)
    return w13, w2t


def feed_forward_pallas(x, w1, w2, w3, *, tm=None, tn=None):
    """SwiGLU FFN forward.

    x: [B, S, dim].  w1, w3: [hidden, dim].  w2: [dim, hidden]
    (PyTorch nn.Linear (out_features, in_features) layout).
    """
    B, S, dim = x.shape
    hidden = w1.shape[0]
    out_dtype = x.dtype
    acc_in_out = (jnp.dtype(out_dtype) == jnp.float32)

    M = B * S
    budget = _vmem_budget_bytes()
    tm, tn = _choose_tiles(M, dim, hidden, jnp.dtype(out_dtype).itemsize,
                           tm, tn, use_scratch=not acc_in_out, budget=budget)
    assert hidden % tn == 0, "hidden must be divisible by the hidden tile tn"

    # NOTE: in real usage call prepare_ffn_weights once and cache the result;
    # it is done here per call only to keep the example self-contained.
    w13, w2t = prepare_ffn_weights(w1, w2, w3, tn=tn)

    m_tiles = pl.cdiv(M, tm)
    M_pad = m_tiles * tm
    h_tiles = hidden // tn

    x2d = x.reshape(M, dim).astype(jnp.bfloat16)
    if M_pad != M:
        x2d = jnp.pad(x2d, ((0, M_pad - M), (0, 0)))

    weight_bytes = (w13.size + w2t.size) * 2  # bf16
    cost = pl.CostEstimate(
        flops=6 * M_pad * dim * hidden,
        transcendentals=M_pad * hidden,
        bytes_accessed=int(
            M_pad * dim * 2                                   # x (bf16)
            + M_pad * dim * jnp.dtype(out_dtype).itemsize     # output
            + weight_bytes * m_tiles                          # weights per M tile
        ),
    )

    in_specs = [
        # x tile: resident across the hidden axis.
        pl.BlockSpec((tm, dim), lambda i, j: (i, 0)),
        # fused [W1;W3]^T tile for hidden range j (contiguous HBM slab).
        pl.BlockSpec((None, dim, 2 * tn), lambda i, j: (j, 0, 0)),
        # W2^T tile for hidden range j (contiguous HBM slab).
        pl.BlockSpec((None, tn, dim), lambda i, j: (j, 0, 0)),
    ]
    out_spec = pl.BlockSpec((tm, dim), lambda i, j: (i, 0))

    if acc_in_out:
        kernel = _ffn_kernel_acc_in_out
        scratch_shapes = []
    else:
        kernel = _ffn_kernel_scratch
        scratch_shapes = [pltpu.VMEM((tm, dim), jnp.float32)]

    out2d = pl.pallas_call(
        kernel,
        out_shape=jax.ShapeDtypeStruct((M_pad, dim), out_dtype),
        grid_spec=pltpu.PrefetchScalarGridSpec(
            num_scalar_prefetch=0,
            grid=(m_tiles, h_tiles),
            in_specs=in_specs,
            out_specs=out_spec,
            scratch_shapes=scratch_shapes,
        ),
        compiler_params=pltpu.CompilerParams(
            dimension_semantics=("parallel", "arbitrary"),
            vmem_limit_bytes=budget,
        ),
        cost_estimate=cost,
    )(x2d, w13, w2t)

    return out2d[:M].reshape(B, S, dim)


def _llama_hidden_dim(dim, hidden_dim, multiple_of, ffn_dim_multiplier):
    hidden_dim = int(2 * hidden_dim / 3)
    if ffn_dim_multiplier is not None:
        hidden_dim = int(ffn_dim_multiplier * hidden_dim)
    hidden_dim = multiple_of * ((hidden_dim + multiple_of - 1) // multiple_of)
    return hidden_dim


if __name__ == "__main__":
    # Small, TPU-tile-friendly config following the Llama hidden-dim formula.
    dim = 256
    hidden_dim_arg = 4 * dim          # 1024
    multiple_of = 256
    ffn_dim_multiplier = None
    hidden = _llama_hidden_dim(dim, hidden_dim_arg, multiple_of,
                               ffn_dim_multiplier)  # -> 768

    B, S = 2, 96                      # M = 192 -> exercises token padding

    key = jax.random.PRNGKey(0)
    kx, k1, k2, k3 = jax.random.split(key, 4)
    x = jax.random.normal(kx, (B, S, dim), dtype=jnp.float32)
    # PyTorch nn.Linear weight layout: (out_features, in_features)
    w1 = jax.random.normal(k1, (hidden, dim), dtype=jnp.float32) * 0.02
    w2 = jax.random.normal(k2, (dim, hidden), dtype=jnp.float32) * 0.02
    w3 = jax.random.normal(k3, (hidden, dim), dtype=jnp.float32) * 0.02

    out = feed_forward_pallas(x, w1, w2, w3)
    out = jax.block_until_ready(out)
    assert out.shape == (B, S, dim)

    # Pure-JAX reference with matching bf16 matmul numerics (f32 accumulation).
    xb = x.reshape(B * S, dim).astype(jnp.bfloat16)
    w1b, w2b, w3b = (w.astype(jnp.bfloat16) for w in (w1, w2, w3))
    h1 = jnp.dot(xb, w1b.T, preferred_element_type=jnp.float32)
    h3 = jnp.dot(xb, w3b.T, preferred_element_type=jnp.float32)
    g = (h1 * jax.nn.sigmoid(h1)) * h3
    ref = jnp.dot(g.astype(jnp.bfloat16), w2b.T,
                  preferred_element_type=jnp.float32)
    ref = ref.reshape(B, S, dim).astype(x.dtype)

    assert jnp.allclose(out, ref, atol=2e-2, rtol=2e-2), "mismatch vs reference"

    print("KERNEL_OK")
</pallas_src>

<mosaic_0001>
module attributes {stable_mosaic.version = 11 : i64} {
  func.func @_ffn_kernel_acc_in_out(%arg0: i32, %arg1: i32, %arg2: memref<256x256xbf16, #tpu.memory_space<vmem>>, %arg3: memref<1x256x512xbf16, #tpu.memory_space<vmem>>, %arg4: memref<1x256x256xbf16, #tpu.memory_space<vmem>>, %arg5: memref<256x256xf32, #tpu.memory_space<vmem>>) attributes {dimension_semantics = [#tpu.dimension_semantics<parallel>, #tpu.dimension_semantics<arbitrary>], iteration_bounds = array<i64: 1, 3>, scalar_prefetch = 0 : i64, scratch_operands = 0 : i64, tpu.core_type = #tpu.core_type<tc>, window_params = [{transform_indices = @transform_0, window_bounds = array<i64: 256, 256>}, {transform_indices = @transform_1, window_bounds = array<i64: 1, 256, 512>}, {transform_indices = @transform_2, window_bounds = array<i64: 1, 256, 256>}, {transform_indices = @transform_3, window_bounds = array<i64: 256, 256>}]} {
    %c0_i32 = arith.constant 0 : i32
    %0 = arith.cmpi eq, %arg1, %c0_i32 : i32
    %1 = arith.extui %0 : i1 to i32
    %c0_i32_0 = arith.constant 0 : i32
    %2 = arith.cmpi ne, %1, %c0_i32_0 : i32
    scf.if %2 {
      %cst_14 = arith.constant 0.000000e+00 : f32
      %23 = vector.broadcast %cst_14 : f32 to vector<256x256xf32>
      %c0_15 = arith.constant 0 : index
      %c0_16 = arith.constant 0 : index
      %24 = vector.load %arg5[%c0_15, %c0_16] : memref<256x256xf32, #tpu.memory_space<vmem>>, vector<256x256xf32>
      tpu.vector_store %arg5[%c0_15, %c0_16], %23 {strides = array<i32>} : memref<256x256xf32, #tpu.memory_space<vmem>>, vector<256x256xf32>,
    } else {
    }
    %c0 = arith.constant 0 : index
    %c0_1 = arith.constant 0 : index
    %3 = vector.load %arg2[%c0, %c0_1] : memref<256x256xbf16, #tpu.memory_space<vmem>>, vector<256x256xbf16>
    %c0_2 = arith.constant 0 : index
    %c0_3 = arith.constant 0 : index
    %c0_4 = arith.constant 0 : index
    %4 = vector.load %arg3[%c0_2, %c0_3, %c0_4] : memref<1x256x512xbf16, #tpu.memory_space<vmem>>, vector<1x256x512xbf16>
    %5 = vector.shape_cast %4 : vector<1x256x512xbf16> to vector<256x512xbf16>
    %cst = arith.constant dense<0.000000e+00> : vector<256x512xf32>
    %6 = tpu.matmul %3, %5, %cst {dimension_numbers = #tpu.dot_dimension_numbers<[1], [0], [0], [1], [0, 0, 1, 1], [], []>} : vector<256x256xbf16>, vector<256x512xbf16>, vector<256x512xf32> -> vector<256x512xf32>
    %7 = vector.extract_strided_slice %6 {offsets = [0, 0], sizes = [256, 256], strides = [1, 1]} : vector<256x512xf32> to vector<256x256xf32>
    %8 = vector.extract_strided_slice %6 {offsets = [0, 256], sizes = [256, 256], strides = [1, 1]} : vector<256x512xf32> to vector<256x256xf32>
    %9 = arith.negf %7 : vector<256x256xf32>
    %10 = math.exp %9 : vector<256x256xf32>
    %cst_5 = arith.constant 1.000000e+00 : f32
    %11 = vector.broadcast %cst_5 : f32 to vector<256x256xf32>
    %12 = arith.addf %11, %10 : vector<256x256xf32>
    %13 = arith.divf %11, %12 : vector<256x256xf32>
    %14 = arith.mulf %7, %13 : vector<256x256xf32>
    %15 = arith.mulf %14, %8 : vector<256x256xf32>
    %c0_6 = arith.constant 0 : index
    %c0_7 = arith.constant 0 : index
    %16 = vector.load %arg5[%c0_6, %c0_7] : memref<256x256xf32, #tpu.memory_space<vmem>>, vector<256x256xf32>
    %17 = arith.truncf %15 : vector<256x256xf32> to vector<256x256xbf16>
    %c0_8 = arith.constant 0 : index
    %c0_9 = arith.constant 0 : index
    %c0_10 = arith.constant 0 : index
    %18 = vector.load %arg4[%c0_8, %c0_9, %c0_10] : memref<1x256x256xbf16, #tpu.memory_space<vmem>>, vector<1x256x256xbf16>
    %19 = vector.shape_cast %18 : vector<1x256x256xbf16> to vector<256x256xbf16>
    %cst_11 = arith.constant dense<0.000000e+00> : vector<256x256xf32>
    %20 = tpu.matmul %17, %19, %cst_11 {dimension_numbers = #tpu.dot_dimension_numbers<[1], [0], [0], [1], [0, 0, 1, 1], [], []>} : vector<256x256xbf16>, vector<256x256xbf16>, vector<256x256xf32> -> vector<256x256xf32>
    %21 = arith.addf %16, %20 : vector<256x256xf32>
    %c0_12 = arith.constant 0 : index
    %c0_13 = arith.constant 0 : index
    %22 = vector.load %arg5[%c0_12, %c0_13] : memref<256x256xf32, #tpu.memory_space<vmem>>, vector<256x256xf32>
    tpu.vector_store %arg5[%c0_12, %c0_13], %21 {strides = array<i32>} : memref<256x256xf32, #tpu.memory_space<vmem>>, vector<256x256xf32>,
    return
  }
  func.func @transform_0(%arg0: i32, %arg1: i32) -> (i32, i32) {
    %c0_i32 = arith.constant 0 : i32
    %c0_i32_0 = arith.constant 0 : i32
    return %arg0, %c0_i32 : i32, i32
  }
  func.func @transform_1(%arg0: i32, %arg1: i32) -> (i32, i32, i32) {
    %c0_i32 = arith.constant 0 : i32
    %c0_i32_0 = arith.constant 0 : i32
    %c0_i32_1 = arith.constant 0 : i32
    return %arg1, %c0_i32, %c0_i32_0 : i32, i32, i32
  }
  func.func @transform_2(%arg0: i32, %arg1: i32) -> (i32, i32, i32) {
    %c0_i32 = arith.constant 0 : i32
    %c0_i32_0 = arith.constant 0 : i32
    %c0_i32_1 = arith.constant 0 : i32
    return %arg1, %c0_i32, %c0_i32_0 : i32, i32, i32
  }
  func.func @transform_3(%arg0: i32, %arg1: i32) -> (i32, i32) {
    %c0_i32 = arith.constant 0 : i32
    %c0_i32_0 = arith.constant 0 : i32
    return %arg0, %c0_i32 : i32, i32
  }
}

</mosaic_0001>

<bundles_post_ra>
// kernel: tpu_custom_call.1
= control target key start
LH: loop header
LB: loop body
LE: loop exit
PB: predicated region body
PF: predicated region fallthrough
CT: control target
= control target key end

     0   :  { %8 = vsyncpa [#allocation3], 0  ;;  %s4433_s0 = inlined_call_operand.hbm [shape: bf16[256,256], index: 0, kind: input, shape index: {}]   ;;  %s4434_s1 = inlined_call_operand.hbm [shape: bf16[3,256,512], index: 1, kind: input, shape index: {}]   ;;  %s4435_s2 = inlined_call_operand.hbm [shape: bf16[3,256,256], index: 2, kind: input, shape index: {}]   ;;  %s4436_s3 = inlined_call_operand.hbm [shape: f32[256,256], index: 3, kind: output, shape index: {}]  }
   0x1   :  { %9 = vsyncpa [#allocation6], 0 }
   0x2   :  { %11 = vsyncpa [#allocation6 + $0x1], 0 }
   0x3   :  { %12 = vsyncpa [#allocation4], 0  ;;  %s3499_s12 = smov 0   ;;  %s3501_s13 = smov 0  }
   0x4   :  { %s3503_s14 = smov 0   ;;  %s3505_s15 = smov 0  }
   0x5   :  { %s3507_s16 = smov 0   ;;  %s3509_s17 = smov 0  }
   0x6 LB: > { %s27_s18 = sadd.s32 1, %s3462_s16  ;;  %s63_s19 = sadd.s32 1, %s3454_s14  ;;  %s3466_s17 = sphi %s3509_s17, %s18_s17   ;;  %s3462_s16 = sphi %s3507_s16, %s4545_s16   ;;  %s3458_s15 = sphi %s3505_s15, %s4544_s15   ;;  %s3454_s14 = sphi %s3503_s14, %s4543_s14   ;;  %s3450_s13 = sphi %s3501_s13, %s4542_s13   ;;  %s3446_s12 = sphi %s3499_s12, %s4541_s12  }
   0x7   : > { %p28_p0 = scmp.ge.s32.totalorder %s27_s18, 3  ;;  %p70_p1 = scmp.ne.s32.totalorder %s3454_s14, %s3450_s13 }
   0x8   : > { %p71_p2 = scmp.eq.s32.totalorder %s3466_s17, 0  ;;  %p2785_p4 = scmp.lt.s32.totalorder %s3466_s17, 3 }
   0x9   : > { %s4547_s18 = smov (%p28_p0, %s27_s18), 0  ;;  %s169_s21 = sand.u32 1, %s3466_s17  }
   0xa   : > { %p72_p3 = por %p71_p2, %p70_p1  ;;  %s60_s20 = ssub.s32 %s3462_s16, %s4547_s18 }
   0xb   : > { %p61_p5 = scmp.eq.s32.totalorder %s60_s20, 0  ;;  %s171_s22 = sand.u32 1, %s3454_s14  }
   0xc   : > { %s2727_s23 = sshll.u32 %s3462_s16, 13  ;;  %s2520_s25 = sshll.u32 %s171_s22, 9 }
   0xd   : > { %s3543_s24 = scalar_select %p61_p5, %s3454_s14, %s63_s19  }
   0xe   : > { %s3548_s28 = scalar_lea.hbm %s4434_s1, %s2727_s23  ;;  %p3550_p6 = pnand %p2785_p4, %p72_p3 }
   0xf   : > { %s173_s30 = scalar_lea.vmem [#allocation5], %s2520_s25  ;;  %s3556_s5 = sshll.u32 %s171_s22, 8 }
  0x10   : > { %s180_s4 = sshll.u32 %s173_s30, 4  ;;  %s3558_s6 = scalar_lea.sflag [#allocation6], %s169_s21  ;;  %s3554_s4 = int_to_ptr.vmem [resolvable:$true] %s180_s4 }
  0x11   : > { %s3294_s7 = scalar_lea.hbm %s3548_s28, 8192  ;;  %p3296_p8 = pneg %p3550_p6 }
  0x12   : > { %p3295_p7 = scmp.ne.s32.totalorder %s3548_s28, %s3294_s7  ;;  %s3299_s10 = scalar_lea.hbm %s4434_s1, 24576 }
  0x13   : > { %p3300_p11 = scmp.lt.u32.totalorder %s3548_s28, %s4434_s1  ;;  %p3301_p12 = scmp.lt.u32.totalorder %s3299_s10, %s3294_s7 }
  0x14   : > { %p3297_p9 = pnand %p3296_p8, %p3295_p7  ;;  %p3303_p0 = scmp.lt.u32.totalorder %s3294_s7, %s3548_s28 }
  0x15   : > { %p3302_p13 = por %p3301_p12, %p3300_p11 }
  0x16   : > { %p3298_p10 = pneg %p3297_p9 }
  0x17   : > { %p3304_p1 = por %p3303_p0, %p3302_p13 }
  0x19   : > { %p3305_p2 = pnand %p3304_p1, %p3298_p10 }
  0x1b   : > { %3308 = shalt.err (!%p3305_p2)
}
  0x1c   : > { %s3309_s20 = scalar_lea.vmem %s3554_s4, 8192  ;;  %s3468_s21 = smov [#allocation5]  }
  0x1d   : > { %p3310_p3 = scmp.ne.s32.totalorder %s3554_s4, %s3309_s20  ;;  %s3314_s22 = sshll.u32 %s3468_s21, 4  ;;  %s3315_s22 = int_to_ptr.vmem [resolvable:$false] %s3314_s22 }
  0x1e   : > { %s3316_s23 = scalar_lea.vmem %s3315_s22, 16384  ;;  %p3317_p7 = scmp.lt.s32.totalorder %s3554_s4, %s3315_s22 }
  0x1f   : > { %p3312_p4 = pnand %p3310_p3, %p3296_p8  ;;  %p3318_p9 = scmp.lt.s32.totalorder %s3316_s23, %s3309_s20 }
  0x21   : > { %p3313_p5 = pneg %p3312_p4  ;;  %p3319_p11 = por %p3318_p9, %p3317_p7 }
  0x23   : > { %p3320_p12 = pnand %p3319_p11, %p3313_p5 }
  0x25   : > { %3323 = shalt.err (!%p3320_p12)
}
  0x26   : > { %s3469_s25 = smov 256   ;;  %s3470_s26 = smov 16  }
  0x27   : > { %2780 = dma.hbm_to_vmem [thread:$0]  (!%p3550_p6), %s3548_s28, 8192, %s3554_s4, %s3558_s6, %s3469_s25, %s3469_s25, %s3470_s26  }
  0x28   : > { %s194_s27 = scalar_lea.vmem [#allocation7], %s3556_s5  ;;  %s3588_s7 = sadd.s32 4294967295, %s3466_s17  }
  0x29   : > { %s201_s30 = sshll.u32 %s194_s27, 4  ;;  %p76_p10 = scmp.ne.s32.totalorder %s3450_s13, %s3446_s12  ;;  %s3610_s30 = int_to_ptr.vmem [resolvable:$true] %s201_s30 }
  0x2a   : > { %p4437_p13 = scmp.eq.s32.totalorder %s3588_s7, 0  ;;  %p2517_p0 = scmp.ge.s32.totalorder %s3466_s17, 1 }
  0x2b   : > { %p139_p1 = scmp.lt.s32.totalorder %s3466_s17, 4  ;;  %s3471_s28 = smov [#allocation2]  }
  0x2c   : > { %p3597_p2 = por %p4437_p13, %p76_p10  ;;  %s155_s4 = sshll.u32 %s3471_s28, 4  ;;  %s3605_s4 = int_to_ptr.vmem [resolvable:$true] %s155_s4 }
  0x2d   : > { %p3601_p3 = pnand %p2517_p0, %p139_p1  ;;  %s2728_s12 = sshll.u32 %s3462_s16, 12 }
  0x2e   : > { %s4469_s8 = scalar_select %p3597_p2, 1, 0 }
  0x2f   : > { %s4470_s9 = scalar_select %p3601_p3, 1, 0 }
  0x30   : > { %p2773_p4 = pneg %p3601_p3  ;;  %s3621_s19 = scalar_lea.hbm %s4435_s2, %s2728_s12 }
  0x31   : > { %s3324_s20 = scalar_lea.hbm %s3621_s19, 4096  ;;  %s3329_s23 = scalar_lea.hbm %s4435_s2, 12288 }
  0x32   : > { %p3614_p5 = pnand %p2773_p4, %p4437_p13  ;;  %p3325_p7 = scmp.ne.s32.totalorder %s3621_s19, %s3324_s20 }
  0x33   : > { %p3330_p12 = scmp.lt.u32.totalorder %s3621_s19, %s4435_s2  ;;  %p3331_p10 = scmp.lt.u32.totalorder %s3329_s23, %s3324_s20 }
  0x34   : > { %p3327_p9 = pnand %p3325_p7, %p3296_p8  ;;  %p3333_p1 = scmp.lt.u32.totalorder %s3324_s20, %s3621_s19 }
  0x35   : > { %p3332_p0 = por %p3331_p10, %p3330_p12 }
  0x36   : > { %p3328_p11 = pneg %p3327_p9 }
  0x37   : > { %p3334_p4 = por %p3333_p1, %p3332_p0 }
  0x39   : > { %p3335_p13 = pnand %p3334_p4, %p3328_p11 }
  0x3b   : > { %3338 = shalt.err (!%p3335_p13)
}
  0x3c   : > { %s3339_s27 = scalar_lea.vmem %s3610_s30, 4096  ;;  %s3472_s28 = smov [#allocation7]  }
  0x3d   : > { %p3340_p7 = scmp.ne.s32.totalorder %s3610_s30, %s3339_s27  ;;  %s3344_s12 = sshll.u32 %s3472_s28, 4  ;;  %s3345_s12 = int_to_ptr.vmem [resolvable:$false] %s3344_s12 }
  0x3e   : > { %s3346_s10 = scalar_lea.vmem %s3345_s12, 8192  ;;  %p3347_p3 = scmp.lt.s32.totalorder %s3610_s30, %s3345_s12 }
  0x3f   : > { %p3342_p9 = pnand %p3340_p7, %p3296_p8  ;;  %p3348_p12 = scmp.lt.s32.totalorder %s3346_s10, %s3339_s27 }
  0x41   : > { %p3343_p2 = pneg %p3342_p9  ;;  %p3349_p10 = por %p3348_p12, %p3347_p3 }
  0x43   : > { %p3350_p0 = pnand %p3349_p10, %p3343_p2 }
  0x45   : > { %3353 = shalt.err (!%p3350_p0)
}
  0x46   : > { %s3473_s11 = smov 128   ;;  %s3474_s20 = smov 8  }
  0x47   : > { %2783 = dma.hbm_to_vmem [thread:$0]  (!%p3550_p6), %s3621_s19, 4096, %s3610_s30, %s3558_s6, %s3473_s11, %s3473_s11, %s3474_s20  }
  0x48   : > { %s3354_s23 = scalar_lea.hbm %s4433_s0, 4096  ;;  %p3356_p13 = pneg %p3614_p5 }
  0x49   : > { %p3355_p8 = scmp.ne.s32.totalorder %s4433_s0, %s3354_s23  ;;  %p3361_p11 = scmp.lt.u32.totalorder %s3354_s23, %s4433_s0 }
  0x4b   : > { %p3357_p2 = pnand %p3356_p13, %p3355_p8 }
  0x4d   : > { %p3358_p3 = pneg %p3357_p2 }
  0x4f   : > { %p3363_p1 = pnand %p3361_p11, %p3358_p3 }
  0x51   : > { %3366 = shalt.err (!%p3363_p1)
}
  0x52   : > { %s3367_s29 = scalar_lea.vmem %s3605_s4, 4096  ;;  %p3375_p9 = scmp.lt.s32.totalorder %s3605_s4, %s3605_s4 }
  0x53   : > { %p3368_p6 = scmp.ne.s32.totalorder %s3605_s4, %s3367_s29  ;;  %p3376_p12 = scmp.lt.s32.totalorder %s3367_s29, %s3367_s29 }
  0x55   : > { %p3370_p4 = pnand %p3368_p6, %p3356_p13  ;;  %p3377_p10 = por %p3376_p12, %p3375_p9 }
  0x57   : > { %p3371_p7 = pneg %p3370_p4 }
  0x59   : > { %p3378_p0 = pnand %p3377_p10, %p3371_p7 }
  0x5b   : > { %3381 = shalt.err (!%p3378_p0)
}
  0x5c   : > { %2776 = dma.hbm_to_vmem [thread:$0]  (!%p3614_p5), %s4433_s0, 4096, %s3605_s4, [#allocation3], %s3473_s11, %s3473_s11, %s3474_s20  }
  0x5d   : > { %p4472_p8 = scmp.ne.s32.totalorder %s4470_s9, 0 }
  0x5f   : > { %213 = sbr.rel (%p4472_p8) target bundleno = 870 (0x366), region = 32 }
  0x66   : > { %p4473_p2 = scmp.eq.s32.totalorder %s3588_s7, 0 }
  0x68   : > { %3433 = dma.done.wait (%p4473_p2), [#allocation3], 4096   ;;  %p4474_p13 = pmov %p4473_p2 }
  0x69   : > { %s219_s19 = sand.u32 1, %s3588_s7   ;;  %s221_s12 = sand.u32 1, %s3450_s13  }
  0x6a   : > { %3435 = vsyncadd (%p4474_p13), [#allocation3], 4294963200  ;;  %s2528_s5 = sshll.u32 %s221_s12, 9  ;;  %s220_s10 = scalar_lea.sflag [#allocation6], %s219_s19 }
  0x6b   : > { %s3676_s21 = scalar_lea.vmem [#allocation5], %s2528_s5  ;;  %p4475_p3 = scmp.ne.s32.totalorder %s4469_s8, 0 }
  0x6d   : > { %3437 = dma.done.wait (%p4475_p3), %s220_s10, 12288  }
  0x6e   : > { %3439 = vsyncadd (%p4475_p3), %s220_s10, 4294955008  ;;  %s2529_s9 = sshll.u32 %s221_s12, 8  ;;  %p2530_p5 = scmp.ne.s32.totalorder %s3458_s15, 0 }
  0x6f   : > { %s3682_s4 = scalar_lea.vmem [#allocation7], %s2529_s9  ;;  %v3475_v0 = vmov (!%p2530_p5), 0.0  }
  0x70   : > { %260 = sbr.rel (%p2530_p5) target bundleno = 144 (0x90), region = 48  ;;  %261 = vst [vmem:[#allocation8] sm:$0xff] (!%p2530_p5), %v3475_v0  ;;  %262 = vst [vmem:[#allocation8 + $0x8] sm:$0xff] (!%p2530_p5), %v3475_v0 }
  0x71   : > { %263 = vst [vmem:[#allocation8 + $0x10] sm:$0xff] (!%p2530_p5), %v3475_v0  ;;  %264 = vst [vmem:[#allocation8 + $0x18] sm:$0xff] (!%p2530_p5), %v3475_v0 }
  0x72   : > { %265 = vst [vmem:[#allocation8 + $0x20] sm:$0xff] (!%p2530_p5), %v3475_v0  ;;  %266 = vst [vmem:[#allocation8 + $0x28] sm:$0xff] (!%p2530_p5), %v3475_v0 }
  0x73   : > { %267 = vst [vmem:[#allocation8 + $0x30] sm:$0xff] (!%p2530_p5), %v3475_v0  ;;  %268 = vst [vmem:[#allocation8 + $0x38] sm:$0xff] (!%p2530_p5), %v3475_v0 }
  0x74   : > { %269 = vst [vmem:[#allocation8 + $0x40] sm:$0xff] (!%p2530_p5), %v3475_v0  ;;  %270 = vst [vmem:[#allocation8 + $0x48] sm:$0xff] (!%p2530_p5), %v3475_v0 }
  0x75   : > { %271 = vst [vmem:[#allocation8 + $0x50] sm:$0xff] (!%p2530_p5), %v3475_v0  ;;  %272 = vst [vmem:[#allocation8 + $0x58] sm:$0xff] (!%p2530_p5), %v3475_v0 }
  0x76   : > { %273 = vst [vmem:[#allocation8 + $0x60] sm:$0xff] (!%p2530_p5), %v3475_v0  ;;  %274 = vst [vmem:[#allocation8 + $0x68] sm:$0xff] (!%p2530_p5), %v3475_v0 }
  0x77   : > { %275 = vst [vmem:[#allocation8 + $0x70] sm:$0xff] %v3475_v0  ;;  %276 = vst [vmem:[#allocation8 + $0x78] sm:$0xff] %v3475_v0 }
  0x78   : > { %277 = vst [vmem:[#allocation8 + $0x80] sm:$0xff] %v3475_v0  ;;  %278 = vst [vmem:[#allocation8 + $0x88] sm:$0xff] %v3475_v0 }
  0x79   : > { %279 = vst [vmem:[#allocation8 + $0x90] sm:$0xff] %v3475_v0  ;;  %280 = vst [vmem:[#allocation8 + $0x98] sm:$0xff] %v3475_v0 }
  0x7a   : > { %281 = vst [vmem:[#allocation8 + $0xa0] sm:$0xff] %v3475_v0  ;;  %282 = vst [vmem:[#allocation8 + $0xa8] sm:$0xff] %v3475_v0 }
  0x7b   : > { %283 = vst [vmem:[#allocation8 + $0xb0] sm:$0xff] %v3475_v0  ;;  %284 = vst [vmem:[#allocation8 + $0xb8] sm:$0xff] %v3475_v0 }
  0x7c   : > { %285 = vst [vmem:[#allocation8 + $0xc0] sm:$0xff] %v3475_v0  ;;  %286 = vst [vmem:[#allocation8 + $0xc8] sm:$0xff] %v3475_v0 }
  0x7d   : > { %287 = vst [vmem:[#allocation8 + $0xd0] sm:$0xff] %v3475_v0  ;;  %288 = vst [vmem:[#allocation8 + $0xd8] sm:$0xff] %v3475_v0 }
  0x7e   : > { %289 = vst [vmem:[#allocation8 + $0xe0] sm:$0xff] %v3475_v0  ;;  %290 = vst [vmem:[#allocation8 + $0xe8] sm:$0xff] %v3475_v0 }
  0x7f   : > { %291 = vst [vmem:[#allocation8 + $0xf0] sm:$0xff] %v3475_v0  ;;  %292 = vst [vmem:[#allocation8 + $0xf8] sm:$0xff] %v3475_v0 }
  0x80   : > { %293 = vst [vmem:[#allocation8 + $0x100] sm:$0xff] %v3475_v0  ;;  %294 = vst [vmem:[#allocation8 + $0x108] sm:$0xff] %v3475_v0 }
  0x81   : > { %295 = vst [vmem:[#allocation8 + $0x110] sm:$0xff] %v3475_v0  ;;  %296 = vst [vmem:[#allocation8 + $0x118] sm:$0xff] %v3475_v0 }
  0x82   : > { %297 = vst [vmem:[#allocation8 + $0x120] sm:$0xff] %v3475_v0  ;;  %298 = vst [vmem:[#allocation8 + $0x128] sm:$0xff] %v3475_v0 }
  0x83   : > { %299 = vst [vmem:[#allocation8 + $0x130] sm:$0xff] %v3475_v0  ;;  %300 = vst [vmem:[#allocation8 + $0x138] sm:$0xff] %v3475_v0 }
  0x84   : > { %301 = vst [vmem:[#allocation8 + $0x140] sm:$0xff] %v3475_v0  ;;  %302 = vst [vmem:[#allocation8 + $0x148] sm:$0xff] %v3475_v0 }
  0x85   : > { %303 = vst [vmem:[#allocation8 + $0x150] sm:$0xff] %v3475_v0  ;;  %304 = vst [vmem:[#allocation8 + $0x158] sm:$0xff] %v3475_v0 }
  0x86   : > { %305 = vst [vmem:[#allocation8 + $0x160] sm:$0xff] %v3475_v0  ;;  %306 = vst [vmem:[#allocation8 + $0x168] sm:$0xff] %v3475_v0 }
  0x87   : > { %307 = vst [vmem:[#allocation8 + $0x170] sm:$0xff] %v3475_v0  ;;  %308 = vst [vmem:[#allocation8 + $0x178] sm:$0xff] %v3475_v0 }
  0x88   : > { %309 = vst [vmem:[#allocation8 + $0x180] sm:$0xff] %v3475_v0  ;;  %310 = vst [vmem:[#allocation8 + $0x188] sm:$0xff] %v3475_v0 }
  0x89   : > { %311 = vst [vmem:[#allocation8 + $0x190] sm:$0xff] %v3475_v0  ;;  %312 = vst [vmem:[#allocation8 + $0x198] sm:$0xff] %v3475_v0 }
  0x8a   : > { %313 = vst [vmem:[#allocation8 + $0x1a0] sm:$0xff] %v3475_v0  ;;  %314 = vst [vmem:[#allocation8 + $0x1a8] sm:$0xff] %v3475_v0 }
  0x8b   : > { %315 = vst [vmem:[#allocation8 + $0x1b0] sm:$0xff] %v3475_v0  ;;  %316 = vst [vmem:[#allocation8 + $0x1b8] sm:$0xff] %v3475_v0 }
  0x8c   : > { %317 = vst [vmem:[#allocation8 + $0x1c0] sm:$0xff] %v3475_v0  ;;  %318 = vst [vmem:[#allocation8 + $0x1c8] sm:$0xff] %v3475_v0 }
  0x8d   : > { %319 = vst [vmem:[#allocation8 + $0x1d0] sm:$0xff] %v3475_v0  ;;  %320 = vst [vmem:[#allocation8 + $0x1d8] sm:$0xff] %v3475_v0 }
  0x8e   : > { %321 = vst [vmem:[#allocation8 + $0x1e0] sm:$0xff] %v3475_v0  ;;  %322 = vst [vmem:[#allocation8 + $0x1e8] sm:$0xff] %v3475_v0 }
  0x8f   : > { %323 = vst [vmem:[#allocation8 + $0x1f0] sm:$0xff] %v3475_v0  ;;  %324 = vst [vmem:[#allocation8 + $0x1f8] sm:$0xff] %v3475_v0 }
  0x90 PF: > { %v2846_v1 = vld [vmem:[%s3676_s21 + $0x4] ss:$16 sps:$4 sm:$0xff]   ;;  %v2848_v2 = vld [vmem:[%s3676_s21] ss:$16 sps:$4 sm:$0xff]   ;;  %v2899_v36 = vld [vmem:[%s3676_s21 + $0xc] ss:$16 sps:$4 sm:$0xff]  }
  0x91   : > { %2729 = vmatprep.subr.bf16.mxu1 %v2846_v1  ;;  %v2849_v3 = vld [vmem:[%s3676_s21 + $0x24] ss:$16 sps:$4 sm:$0xff]   ;;  %901 = vmatprep.subr.bf16.mxu0 %v2846_v1  ;;  %v2851_v4 = vld [vmem:[%s3676_s21 + $0x20] ss:$16 sps:$4 sm:$0xff]   ;;  %v2897_v37 = vld [vmem:[%s3676_s21 + $0x8] ss:$16 sps:$4 sm:$0xff]  }
  0x92   : > { %2745 = vmatpush1.bf16.msra.mxu1 %v2848_v2  ;;  %902 = vmatpush1.bf16.msra.mxu0 %v2848_v2  ;;  %v2852_v5 = vld [vmem:[%s3676_s21 + $0x44] ss:$16 sps:$4 sm:$0xff]   ;;  %v2854_v6 = vld [vmem:[%s3676_s21 + $0x40] ss:$16 sps:$4 sm:$0xff]   ;;  %v2902_v38 = vld [vmem:[%s3676_s21 + $0x2c] ss:$16 sps:$4 sm:$0xff]  }
  0x93   : > { %2730 = vmatprep.subr.bf16.mxu1 %v2849_v3  ;;  %903 = vmatprep.subr.bf16.mxu0 %v2849_v3  ;;  %v2855_v7 = vld [vmem:[%s3676_s21 + $0x64] ss:$16 sps:$4 sm:$0xff]   ;;  %v2857_v8 = vld [vmem:[%s3676_s21 + $0x60] ss:$16 sps:$4 sm:$0xff]   ;;  %v2900_v42 = vld [vmem:[%s3676_s21 + $0x28] ss:$16 sps:$4 sm:$0xff]  }
  0x94   : > { %v2858_v9 = vld [vmem:[%s3676_s21 + $0x84] ss:$16 sps:$4 sm:$0xff]   ;;  %v2860_v10 = vld [vmem:[%s3676_s21 + $0x80] ss:$16 sps:$4 sm:$0xff]   ;;  %v2911_v43 = vld [vmem:[%s3676_s21 + $0x4c] ss:$16 sps:$4 sm:$0xff]  }
  0x95   : > { %v2861_v11 = vld [vmem:[%s3676_s21 + $0xa4] ss:$16 sps:$4 sm:$0xff]   ;;  %v2863_v12 = vld [vmem:[%s3676_s21 + $0xa0] ss:$16 sps:$4 sm:$0xff]   ;;  %v2909_v46 = vld [vmem:[%s3676_s21 + $0x48] ss:$16 sps:$4 sm:$0xff]  }
  0x96   : > { %2746 = vmatpush1.bf16.msra.mxu1 %v2851_v4  ;;  %904 = vmatpush1.bf16.msra.mxu0 %v2851_v4  ;;  %v2864_v13 = vld [vmem:[%s3676_s21 + $0xc4] ss:$16 sps:$4 sm:$0xff]   ;;  %v2866_v15 = vld [vmem:[%s3676_s21 + $0xc0] ss:$16 sps:$4 sm:$0xff]   ;;  %v2914_v48 = vld [vmem:[%s3676_s21 + $0x6c] ss:$16 sps:$4 sm:$0xff]  }
  0x97   : > { %2731 = vmatprep.subr.bf16.mxu1 %v2852_v5  ;;  %905 = vmatprep.subr.bf16.mxu0 %v2852_v5  ;;  %v3762_v14 = vld [vmem:[#allocation2 + $0x84] ss:$8 sps:$4 sm:$0xff]   ;;  %v2869_v18 = vld [vmem:[%s3676_s21 + $0xe0] ss:$16 sps:$4 sm:$0xff]   ;;  %v3794_v40 = vld [vmem:[#allocation2 + $0x94] ss:$8 sps:$4 sm:$0xff]  }
  0x98   : > { %v2867_v16 = vld [vmem:[%s3676_s21 + $0xe4] ss:$16 sps:$4 sm:$0xff]   ;;  %1013 = vmatprep.mubr.bf16.mxu1 %v3762_v14  ;;  %v2872_v20 = vld [vmem:[%s3676_s21 + $0x100] ss:$16 sps:$4 sm:$0xff]   ;;  %v2912_v50 = vld [vmem:[%s3676_s21 + $0x68] ss:$16 sps:$4 sm:$0xff]  }
  0x99   : > { %v3767_v17 = vld [vmem:[#allocation2 + $0x4] ss:$8 sps:$4 sm:$0xff]   ;;  %v2875_v22 = vld [vmem:[%s3676_s21 + $0x120] ss:$16 sps:$4 sm:$0xff]   ;;  %v3796_v41 = vld [vmem:[#allocation2 + $0x14] ss:$8 sps:$4 sm:$0xff]  }
  0x9a   : > { %2747 = vmatpush1.bf16.msra.mxu1 %v2854_v6  ;;  %906 = vmatpush1.bf16.msra.mxu0 %v2854_v6  ;;  %v2870_v19 = vld [vmem:[%s3676_s21 + $0x104] ss:$16 sps:$4 sm:$0xff]   ;;  %v2878_v24 = vld [vmem:[%s3676_s21 + $0x140] ss:$16 sps:$4 sm:$0xff]   ;;  %v2923_v51 = vld [vmem:[%s3676_s21 + $0x8c] ss:$16 sps:$4 sm:$0xff]  }
  0x9b   : > { %2732 = vmatprep.subr.bf16.mxu1 %v2855_v7  ;;  %907 = vmatprep.subr.bf16.mxu0 %v2855_v7  ;;  %v2873_v21 = vld [vmem:[%s3676_s21 + $0x124] ss:$16 sps:$4 sm:$0xff]   ;;  %v2881_v26 = vld [vmem:[%s3676_s21 + $0x160] ss:$16 sps:$4 sm:$0xff]   ;;  %v2921_v54 = vld [vmem:[%s3676_s21 + $0x88] ss:$16 sps:$4 sm:$0xff]  }
  0x9c   : > { %933 = vmatprep.mubr.bf16.mxu0 %v3767_v17  ;;  %v2876_v23 = vld [vmem:[%s3676_s21 + $0x144] ss:$16 sps:$4 sm:$0xff]   ;;  %v2884_v28 = vld [vmem:[%s3676_s21 + $0x180] ss:$16 sps:$4 sm:$0xff]   ;;  %v2926_v56 = vld [vmem:[%s3676_s21 + $0xac] ss:$16 sps:$4 sm:$0xff]  }
  0x9d   : > { %v2879_v25 = vld [vmem:[%s3676_s21 + $0x164] ss:$16 sps:$4 sm:$0xff]   ;;  %v2887_v30 = vld [vmem:[%s3676_s21 + $0x1a0] ss:$16 sps:$4 sm:$0xff]   ;;  %v2924_v58 = vld [vmem:[%s3676_s21 + $0xa8] ss:$16 sps:$4 sm:$0xff]  }
  0x9e   : > { %2748 = vmatpush1.bf16.msra.mxu1 %v2857_v8  ;;  %908 = vmatpush1.bf16.msra.mxu0 %v2857_v8  ;;  %v2882_v27 = vld [vmem:[%s3676_s21 + $0x184] ss:$16 sps:$4 sm:$0xff]   ;;  %v2890_v32 = vld [vmem:[%s3676_s21 + $0x1c0] ss:$16 sps:$4 sm:$0xff]   ;;  %v2935_v59 = vld [vmem:[%s3676_s21 + $0xcc] ss:$16 sps:$4 sm:$0xff]  }
  0x9f   : > { %2733 = vmatprep.subr.bf16.mxu1 %v2858_v9  ;;  %909 = vmatprep.subr.bf16.mxu0 %v2858_v9  ;;  %v2885_v29 = vld [vmem:[%s3676_s21 + $0x1a4] ss:$16 sps:$4 sm:$0xff]   ;;  %v2893_v34 = vld [vmem:[%s3676_s21 + $0x1e0] ss:$16 sps:$4 sm:$0xff]   ;;  %v2933_v62 = vld [vmem:[%s3676_s21 + $0xc8] ss:$16 sps:$4 sm:$0xff]  }
  0xa0   : > { %v2888_v31 = vld [vmem:[%s3676_s21 + $0x1c4] ss:$16 sps:$4 sm:$0xff]   ;;  %v3787_v35 = vld [vmem:[#allocation2 + $0x80] ss:$8 sps:$4 sm:$0xff]   ;;  %v3803_v44 = vld [vmem:[#allocation2 + $0x90] ss:$8 sps:$4 sm:$0xff]  }
  0xa1   : > { %v2891_v33 = vld [vmem:[%s3676_s21 + $0x1e4] ss:$16 sps:$4 sm:$0xff]   ;;  %v3792_v39 = vld [vmem:[#allocation2] ss:$8 sps:$4 sm:$0xff]   ;;  %v3806_v45 = vld [vmem:[#allocation2 + $0x10] ss:$8 sps:$4 sm:$0xff]  }
  0xa2   : > { %2749 = vmatpush1.bf16.msra.mxu1 %v2860_v10  ;;  %910 = vmatpush1.bf16.msra.mxu0 %v2860_v10  ;;  %v3809_v47 = vld [vmem:[#allocation2 + $0xa4] ss:$8 sps:$4 sm:$0xff]   ;;  %v3820_v52 = vld [vmem:[#allocation2 + $0xa0] ss:$8 sps:$4 sm:$0xff]   ;;  %v3825_v55 = vld [vmem:[#allocation2 + $0xb4] ss:$8 sps:$4 sm:$0xff]  }
  0xa3   : > { %2734 = vmatprep.subr.bf16.mxu1 %v2861_v11  ;;  %911 = vmatprep.subr.bf16.mxu0 %v2861_v11  ;;  %v3812_v49 = vld [vmem:[#allocation2 + $0x24] ss:$8 sps:$4 sm:$0xff]   ;;  %v3822_v53 = vld [vmem:[#allocation2 + $0x20] ss:$8 sps:$4 sm:$0xff]   ;;  %v3828_v57 = vld [vmem:[#allocation2 + $0x34] ss:$8 sps:$4 sm:$0xff]  }
  0xa4   : > { %v3836_v60 = vld [vmem:[#allocation2 + $0xb0] ss:$8 sps:$4 sm:$0xff]   ;;  %v3841_v63 = vld [vmem:[#allocation2 + $0xc4] ss:$8 sps:$4 sm:$0xff]   ;;  %v3852_v4 = vld [vmem:[#allocation2 + $0xc0] ss:$8 sps:$4 sm:$0xff]  }
  0xa5   : > { %v3838_v61 = vld [vmem:[#allocation2 + $0x30] ss:$8 sps:$4 sm:$0xff]   ;;  %v2938_v0 = vld [vmem:[%s3676_s21 + $0xec] ss:$16 sps:$4 sm:$0xff]   ;;  %v3854_v5 = vld [vmem:[#allocation2 + $0x40] ss:$8 sps:$4 sm:$0xff]  }
  0xa6   : > { %2750 = vmatpush1.bf16.msra.mxu1 %v2863_v12  ;;  %912 = vmatpush1.bf16.msra.mxu0 %v2863_v12  ;;  %v3844_v1 = vld [vmem:[#allocation2 + $0x44] ss:$8 sps:$4 sm:$0xff]   ;;  %v2936_v2 = vld [vmem:[%s3676_s21 + $0xe8] ss:$16 sps:$4 sm:$0xff]   ;;  %v3857_v7 = vld [vmem:[#allocation2 + $0xd4] ss:$8 sps:$4 sm:$0xff]  }
  0xa7   : > { %2735 = vmatprep.subr.bf16.mxu1 %v2864_v13  ;;  %913 = vmatprep.subr.bf16.mxu0 %v2864_v13  ;;  %v2947_v3 = vld [vmem:[%s3676_s21 + $0x10c] ss:$16 sps:$4 sm:$0xff]   ;;  %v2945_v6 = vld [vmem:[%s3676_s21 + $0x108] ss:$16 sps:$4 sm:$0xff]   ;;  %s3476_s15 = smov [#allocation8]   ;;  %p2787_p11 = scmp.eq.s32.totalorder %s3588_s7, 2 }
  0xa8   : > { %v2950_v8 = vld [vmem:[%s3676_s21 + $0x12c] ss:$16 sps:$4 sm:$0xff]   ;;  %v2948_v10 = vld [vmem:[%s3676_s21 + $0x128] ss:$16 sps:$4 sm:$0xff]   ;;  %s2418_s8 = sshll.u32 %s3476_s15, 4  ;;  %s2419_s8 = int_to_ptr.vmem [resolvable:$true] %s2418_s8 }
  0xa9   : > { %v3860_v9 = vld [vmem:[#allocation2 + $0x54] ss:$8 sps:$4 sm:$0xff]   ;;  %v3868_v12 = vld [vmem:[#allocation2 + $0xd0] ss:$8 sps:$4 sm:$0xff]   ;;  %s3382_s11 = scalar_lea.vmem %s2419_s8, 8192  ;;  %p3389_p7 = scmp.lt.s32.totalorder %s2419_s8, %s2419_s8 }
  0xaa   : > { %2751 = vmatpush1.bf16.msra.mxu1 %v2866_v15  ;;  %914 = vmatpush1.bf16.msra.mxu0 %v2866_v15  ;;  %v2959_v11 = vld [vmem:[%s3676_s21 + $0x14c] ss:$16 sps:$4 sm:$0xff]   ;;  %v2967_v13 = vld [vmem:[#allocation2 + $0x50] ss:$8 sps:$4 sm:$0xff]   ;;  %p3383_p1 = scmp.ne.s32.totalorder %s2419_s8, %s3382_s11  ;;  %p3390_p9 = scmp.lt.s32.totalorder %s3382_s11, %s3382_s11 }
  0xab   : > { %2736 = vmatprep.subr.bf16.mxu1 %v2867_v16  ;;  %915 = vmatprep.subr.bf16.mxu0 %v2867_v16  ;;  %v2957_v15 = vld [vmem:[%s3676_s21 + $0x148] ss:$16 sps:$4 sm:$0xff]   ;;  %v3871_v16 = vld [vmem:[#allocation2 + $0xe4] ss:$8 sps:$4 sm:$0xff]  }
  0xac   : > { %p3384_p6 = pnand %p3383_p1, %p2787_p11  ;;  %p3391_p12 = por %p3390_p9, %p3389_p7 }
  0xae   : > { %2752 = vmatpush1.bf16.msra.mxu1 %v2869_v18  ;;  %916 = vmatpush1.bf16.msra.mxu0 %v2869_v18  ;;  %v2962_v18 = vld [vmem:[%s3676_s21 + $0x16c] ss:$16 sps:$4 sm:$0xff]   ;;  %p3385_p4 = pneg %p3384_p6 }
  0xaf   : > { %2737 = vmatprep.subr.bf16.mxu1 %v2870_v19  ;;  %917 = vmatprep.subr.bf16.mxu0 %v2870_v19  ;;  %v2975_v19 = vld [vmem:[#allocation2 + $0x64] ss:$8 sps:$4 sm:$0xff]  }
  0xb0   : > { %p3392_p10 = pnand %p3391_p12, %p3385_p4 }
  0xb2   : > { %2753 = vmatpush1.bf16.msra.mxu1 %v2872_v20  ;;  %918 = vmatpush1.bf16.msra.mxu0 %v2872_v20  ;;  %v2960_v20 = vld [vmem:[%s3676_s21 + $0x168] ss:$16 sps:$4 sm:$0xff]  }
  0xb3   : > { %2738 = vmatprep.subr.bf16.mxu1 %v2873_v21  ;;  %919 = vmatprep.subr.bf16.mxu0 %v2873_v21  ;;  %v2971_v21 = vld [vmem:[%s3676_s21 + $0x18c] ss:$16 sps:$4 sm:$0xff]  }
  0xb6   : > { %2754 = vmatpush1.bf16.msra.mxu1 %v2875_v22  ;;  %920 = vmatpush1.bf16.msra.mxu0 %v2875_v22  ;;  %v3878_v22 = vld [vmem:[#allocation2 + $0xe0] ss:$8 sps:$4 sm:$0xff]  }
  0xb7   : > { %2739 = vmatprep.subr.bf16.mxu1 %v2876_v23  ;;  %921 = vmatprep.subr.bf16.mxu0 %v2876_v23  ;;  %v2979_v23 = vld [vmem:[#allocation2 + $0x60] ss:$8 sps:$4 sm:$0xff]  }
  0xba   : > { %2755 = vmatpush1.bf16.msra.mxu1 %v2878_v24  ;;  %922 = vmatpush1.bf16.msra.mxu0 %v2878_v24  ;;  %v2969_v24 = vld [vmem:[%s3676_s21 + $0x188] ss:$16 sps:$4 sm:$0xff]  }
  0xbb   : > { %2740 = vmatprep.subr.bf16.mxu1 %v2879_v25  ;;  %923 = vmatprep.subr.bf16.mxu0 %v2879_v25  ;;  %v3881_v25 = vld [vmem:[#allocation2 + $0xf4] ss:$8 sps:$4 sm:$0xff]  }
  0xbe   : > { %2756 = vmatpush1.bf16.msra.mxu1 %v2881_v26  ;;  %924 = vmatpush1.bf16.msra.mxu0 %v2881_v26  ;;  %v2974_v26 = vld [vmem:[%s3676_s21 + $0x1ac] ss:$16 sps:$4 sm:$0xff]  }
  0xbf   : > { %2741 = vmatprep.subr.bf16.mxu1 %v2882_v27  ;;  %925 = vmatprep.subr.bf16.mxu0 %v2882_v27  ;;  %v2987_v27 = vld [vmem:[#allocation2 + $0x74] ss:$8 sps:$4 sm:$0xff]  }
  0xc2   : > { %2757 = vmatpush1.bf16.msra.mxu1 %v2884_v28  ;;  %926 = vmatpush1.bf16.msra.mxu0 %v2884_v28  ;;  %v2972_v28 = vld [vmem:[%s3676_s21 + $0x1a8] ss:$16 sps:$4 sm:$0xff]  }
  0xc3   : > { %2742 = vmatprep.subr.bf16.mxu1 %v2885_v29  ;;  %927 = vmatprep.subr.bf16.mxu0 %v2885_v29  ;;  %v2983_v29 = vld [vmem:[%s3676_s21 + $0x1cc] ss:$16 sps:$4 sm:$0xff]  }
  0xc6   : > { %2758 = vmatpush1.bf16.msra.mxu1 %v2887_v30  ;;  %928 = vmatpush1.bf16.msra.mxu0 %v2887_v30  ;;  %v3888_v30 = vld [vmem:[#allocation2 + $0xf0] ss:$8 sps:$4 sm:$0xff]  }
  0xc7   : > { %2743 = vmatprep.subr.bf16.mxu1 %v2888_v31  ;;  %929 = vmatprep.subr.bf16.mxu0 %v2888_v31  ;;  %v2989_v31 = vld [vmem:[#allocation2 + $0x70] ss:$8 sps:$4 sm:$0xff]  }
  0xca   : > { %2759 = vmatpush1.bf16.msra.mxu1 %v2890_v32  ;;  %930 = vmatpush1.bf16.msra.mxu0 %v2890_v32  ;;  %v2981_v32 = vld [vmem:[%s3676_s21 + $0x1c8] ss:$16 sps:$4 sm:$0xff]  }
  0xcb   : > { %2744 = vmatprep.subr.bf16.mxu1 %v2891_v33  ;;  %931 = vmatprep.subr.bf16.mxu0 %v2891_v33  ;;  %v2986_v33 = vld [vmem:[%s3676_s21 + $0x1ec] ss:$16 sps:$4 sm:$0xff]  }
  0xce   : > { %2760 = vmatpush1.bf16.msra.mxu1 %v2893_v34  ;;  %932 = vmatpush1.bf16.msra.mxu0 %v2893_v34  ;;  %v2984_v34 = vld [vmem:[%s3676_s21 + $0x1e8] ss:$16 sps:$4 sm:$0xff]  }
  0xcf   : > { %1094 = vmatprep.subr.bf16.mxu1 %v2899_v36  ;;  %v2990_v36 = vld [vmem:[%s3682_s4] ss:$8 sps:$4 sm:$0xff]  }
  0xd1   : > { %1014 = vmatmul.mubr.bf16.vlgmr.msra.gmra.mrb[0].mxu1 %v3787_v35  ;;  %934 = vmatmul.mubr.bf16.vlgmr.msra.gmra.mrb[0].mxu0 %v3792_v39 }
  0xd2   : > { %1095 = vmatpush1.bf16.msra.mxu1 %v2897_v37  ;;  %1023 = vmatprep.mubr.bf16.mxu1 %v3794_v40  ;;  %v2995_v37 = vld [vmem:[%s3682_s4 + $0x14] ss:$8 sps:$4 sm:$0xff]  }
  0xd3   : > { %1096 = vmatprep.subr.bf16.mxu1 %v2902_v38  ;;  %943 = vmatprep.mubr.bf16.mxu0 %v3796_v41  ;;  %v2993_v38 = vld [vmem:[%s3682_s4 + $0x10] ss:$8 sps:$4 sm:$0xff]  }
  0xd6   : > { %1097 = vmatpush1.bf16.msra.mxu1 %v2900_v42  ;;  %v3001_v42 = vld [vmem:[%s3682_s4 + $0x34] ss:$8 sps:$4 sm:$0xff]  }
  0xd7   : > { %1098 = vmatprep.subr.bf16.mxu1 %v2911_v43  ;;  %v2999_v43 = vld [vmem:[%s3682_s4 + $0x30] ss:$8 sps:$4 sm:$0xff]  }
  0xd9   : > { %1024 = vmatmul.mubr.bf16.gmra.mrb[4].mxu1 %v3803_v44  ;;  %944 = vmatmul.mubr.bf16.gmra.mrb[4].mxu0 %v3806_v45 }
  0xda   : > { %1099 = vmatpush1.bf16.msra.mxu1 %v2909_v46  ;;  %1033 = vmatprep.mubr.bf16.mxu1 %v3809_v47  ;;  %v3002_v46 = vld [vmem:[%s3682_s4 + $0x40] ss:$8 sps:$4 sm:$0xff]  }
  0xdb   : > { %1100 = vmatprep.subr.bf16.mxu1 %v2914_v48  ;;  %953 = vmatprep.mubr.bf16.mxu0 %v3812_v49  ;;  %v3007_v48 = vld [vmem:[%s3682_s4 + $0x54] ss:$8 sps:$4 sm:$0xff]  }
  0xde   : > { %1101 = vmatpush1.bf16.msra.mxu1 %v2912_v50  ;;  %v3010_v50 = vld [vmem:[%s3682_s4 + $0x64] ss:$8 sps:$4 sm:$0xff]  }
  0xdf   : > { %1102 = vmatprep.subr.bf16.mxu1 %v2923_v51  ;;  %v3019_v51 = vld [vmem:[%s3682_s4 + $0x94] ss:$8 sps:$4 sm:$0xff]  }
  0xe1   : > { %1034 = vmatmul.mubr.bf16.gmra.mrb[8].mxu1 %v3820_v52  ;;  %954 = vmatmul.mubr.bf16.gmra.mrb[8].mxu0 %v3822_v53 }
  0xe2   : > { %1103 = vmatpush1.bf16.msra.mxu1 %v2921_v54  ;;  %1043 = vmatprep.mubr.bf16.mxu1 %v3825_v55  ;;  %v3020_v54 = vld [vmem:[%s3682_s4 + $0xa0] ss:$8 sps:$4 sm:$0xff]  }
  0xe3   : > { %1104 = vmatprep.subr.bf16.mxu1 %v2926_v56  ;;  %963 = vmatprep.mubr.bf16.mxu0 %v3828_v57  ;;  %v3023_v56 = vld [vmem:[%s3682_s4 + $0xb0] ss:$8 sps:$4 sm:$0xff]  }
  0xe6   : > { %1105 = vmatpush1.bf16.msra.mxu1 %v2924_v58  ;;  %v3026_v58 = vld [vmem:[%s3682_s4 + $0xc0] ss:$8 sps:$4 sm:$0xff]  }
  0xe7   : > { %1106 = vmatprep.subr.bf16.mxu1 %v2935_v59  ;;  %v3031_v59 = vld [vmem:[%s3682_s4 + $0xd4] ss:$8 sps:$4 sm:$0xff]  }
  0xe9   : > { %1044 = vmatmul.mubr.bf16.gmra.mrb[12].mxu1 %v3836_v60  ;;  %964 = vmatmul.mubr.bf16.gmra.mrb[12].mxu0 %v3838_v61 }
  0xea   : > { %1107 = vmatpush1.bf16.msra.mxu1 %v2933_v62  ;;  %1053 = vmatprep.mubr.bf16.mxu1 %v3841_v63  ;;  %v3032_v62 = vld [vmem:[%s3682_s4 + $0xe0] ss:$8 sps:$4 sm:$0xff]  }
  0xeb   : > { %1108 = vmatprep.subr.bf16.mxu1 %v2938_v0  ;;  %973 = vmatprep.mubr.bf16.mxu0 %v3844_v1  ;;  %v3035_v0 = vld [vmem:[%s3682_s4 + $0xf0] ss:$8 sps:$4 sm:$0xff]  }
  0xee   : > { %1109 = vmatpush1.bf16.msra.mxu1 %v2936_v2 }
  0xef   : > { %1110 = vmatprep.subr.bf16.mxu1 %v2947_v3 }
  0xf1   : > { %1054 = vmatmul.mubr.bf16.gmra.mrb[16].mxu1 %v3852_v4  ;;  %974 = vmatmul.mubr.bf16.gmra.mrb[16].mxu0 %v3854_v5 }
  0xf2   : > { %1111 = vmatpush1.bf16.msra.mxu1 %v2945_v6  ;;  %1063 = vmatprep.mubr.bf16.mxu1 %v3857_v7 }
  0xf3   : > { %1112 = vmatprep.subr.bf16.mxu1 %v2950_v8  ;;  %983 = vmatprep.mubr.bf16.mxu0 %v3860_v9 }
  0xf6   : > { %1113 = vmatpush1.bf16.msra.mxu1 %v2948_v10 }
  0xf7   : > { %1114 = vmatprep.subr.bf16.mxu1 %v2959_v11 }
  0xf9   : > { %1064 = vmatmul.mubr.bf16.gmra.mrb[20].mxu1 %v3868_v12  ;;  %984 = vmatmul.mubr.bf16.gmra.mrb[20].mxu0 %v2967_v13 }
  0xfa   : > { %1115 = vmatpush1.bf16.msra.mxu1 %v2957_v15  ;;  %1073 = vmatprep.mubr.bf16.mxu1 %v3871_v16 }
  0xfb   : > { %1116 = vmatprep.subr.bf16.mxu1 %v2962_v18  ;;  %993 = vmatprep.mubr.bf16.mxu0 %v2975_v19 }
  0xfe   : > { %1117 = vmatpush1.bf16.msra.mxu1 %v2960_v20 }
  0xff   : > { %1118 = vmatprep.subr.bf16.mxu1 %v2971_v21 }
 0x101   : > { %1074 = vmatmul.mubr.bf16.gmra.mrb[24].mxu1 %v3878_v22  ;;  %994 = vmatmul.mubr.bf16.gmra.mrb[24].mxu0 %v2979_v23 }
 0x102   : > { %1119 = vmatpush1.bf16.msra.mxu1 %v2969_v24  ;;  %1083 = vmatprep.mubr.bf16.mxu1 %v3881_v25 }
 0x103   : > { %1120 = vmatprep.subr.bf16.mxu1 %v2974_v26  ;;  %1003 = vmatprep.mubr.bf16.mxu0 %v2987_v27 }
 0x106   : > { %1121 = vmatpush1.bf16.msra.mxu1 %v2972_v28 }
 0x107   : > { %1122 = vmatprep.subr.bf16.mxu1 %v2983_v29 }
 0x109   : > { %1084 = vmatmul.mubr.bf16.gmra.mrb[28].mxu1 %v3888_v30  ;;  %1004 = vmatmul.mubr.bf16.gmra.mrb[28].mxu0 %v2989_v31 }
 0x10a   : > { %1123 = vmatpush1.bf16.msra.mxu1 %v2981_v32  ;;  %1126 = vmatprep.mubr.bf16.mxu1 %v3767_v17  ;;  %v2992_v17 = vld [vmem:[%s3682_s4 + $0x4] ss:$8 sps:$4 sm:$0xff]  }
 0x10b   : > { %1124 = vmatprep.subr.bf16.mxu1 %v2986_v33  ;;  %2087 = vmatprep.subr.bf16.mxu0 %v2992_v17 }
 0x10c   : > { %2088 = vmatpush1.bf16.msra.mxu0 %v2990_v36 }
 0x10d   : > { %2089 = vmatprep.subr.bf16.mxu0 %v2995_v37 }
 0x10e   : > { %1125 = vmatpush1.bf16.msra.mxu1 %v2984_v34 }
 0x110   : > { %2090 = vmatpush1.bf16.msra.mxu0 %v2993_v38 }
 0x111   : > { %1127 = vmatmul.mubr.bf16.vlgmr.msra.gmra.mrb[32].mxu1 %v3792_v39  ;;  %v2998_v39 = vld [vmem:[%s3682_s4 + $0x24] ss:$8 sps:$4 sm:$0xff]  }
 0x112   : > { %1136 = vmatprep.mubr.bf16.mxu1 %v3796_v41  ;;  %v2996_v41 = vld [vmem:[%s3682_s4 + $0x20] ss:$8 sps:$4 sm:$0xff]   ;;  %2091 = vmatprep.subr.bf16.mxu0 %v2998_v39 }
 0x114   : > { %2092 = vmatpush1.bf16.msra.mxu0 %v2996_v41 }
 0x115   : > { %2093 = vmatprep.subr.bf16.mxu0 %v3001_v42 }
 0x118   : > { %2094 = vmatpush1.bf16.msra.mxu0 %v2999_v43 }
 0x119   : > { %1137 = vmatmul.mubr.bf16.gmra.mrb[36].mxu1 %v3806_v45  ;;  %v3004_v45 = vld [vmem:[%s3682_s4 + $0x44] ss:$8 sps:$4 sm:$0xff]  }
 0x11a   : > { %1146 = vmatprep.mubr.bf16.mxu1 %v3812_v49  ;;  %2095 = vmatprep.subr.bf16.mxu0 %v3004_v45  ;;  %v3005_v49 = vld [vmem:[%s3682_s4 + $0x50] ss:$8 sps:$4 sm:$0xff]  }
 0x11c   : > { %2096 = vmatpush1.bf16.msra.mxu0 %v3002_v46 }
 0x11d   : > { %2097 = vmatprep.subr.bf16.mxu0 %v3007_v48 }
 0x120   : > { %2098 = vmatpush1.bf16.msra.mxu0 %v3005_v49 }
 0x121   : > { %1147 = vmatmul.mubr.bf16.gmra.mrb[40].mxu1 %v3822_v53  ;;  %2099 = vmatprep.subr.bf16.mxu0 %v3010_v50  ;;  %v3022_v53 = vld [vmem:[%s3682_s4 + $0xa4] ss:$8 sps:$4 sm:$0xff]  }
 0x122   : > { %1156 = vmatprep.mubr.bf16.mxu1 %v3828_v57  ;;  %v3028_v57 = vld [vmem:[%s3682_s4 + $0xc4] ss:$8 sps:$4 sm:$0xff]  }
 0x129   : > { %1157 = vmatmul.mubr.bf16.gmra.mrb[44].mxu1 %v3838_v61  ;;  %v3034_v61 = vld [vmem:[%s3682_s4 + $0xe4] ss:$8 sps:$4 sm:$0xff]  }
 0x12a   : > { %1166 = vmatprep.mubr.bf16.mxu1 %v3844_v1 }
 0x131   : > { %1167 = vmatmul.mubr.bf16.gmra.mrb[48].mxu1 %v3854_v5 }
 0x132   : > { %1176 = vmatprep.mubr.bf16.mxu1 %v3860_v9 }
 0x139   : > { %1177 = vmatmul.mubr.bf16.gmra.mrb[52].mxu1 %v2967_v13 }
 0x13a   : > { %1186 = vmatprep.mubr.bf16.mxu1 %v2975_v19 }
 0x141   : > { %1187 = vmatmul.mubr.bf16.gmra.mrb[56].mxu1 %v2979_v23 }
 0x142   : > { %1196 = vmatprep.mubr.bf16.mxu1 %v2987_v27 }
 0x149   : > { %1197 = vmatmul.mubr.bf16.gmra.mrb[60].mxu1 %v2989_v31 }
 0x14a   : > { %1206 = vmatprep.mubr.bf16.mxu1 %v3762_v14  ;;  %v3008_v14 = vld [vmem:[%s3682_s4 + $0x60] ss:$8 sps:$4 sm:$0xff]  }
 0x14b   : > { %2100 = vmatpush1.bf16.msra.mxu0 %v3008_v14 }
 0x151   : > { %1207 = vmatmul.mubr.bf16.gmra.mrb[64].mxu1 %v3787_v35  ;;  %v3013_v35 = vld [vmem:[%s3682_s4 + $0x74] ss:$8 sps:$4 sm:$0xff]  }
 0x152   : > { %1216 = vmatprep.mubr.bf16.mxu1 %v3794_v40  ;;  %v3011_v40 = vld [vmem:[%s3682_s4 + $0x70] ss:$8 sps:$4 sm:$0xff]   ;;  %2101 = vmatprep.subr.bf16.mxu0 %v3013_v35 }
 0x153   : > { %2102 = vmatpush1.bf16.msra.mxu0 %v3011_v40 }
 0x159   : > { %1217 = vmatmul.mubr.bf16.gmra.mrb[68].mxu1 %v3803_v44  ;;  %v3016_v44 = vld [vmem:[%s3682_s4 + $0x84] ss:$8 sps:$4 sm:$0xff]  }
 0x15a   : > { %1226 = vmatprep.mubr.bf16.mxu1 %v3809_v47  ;;  %v3014_v47 = vld [vmem:[%s3682_s4 + $0x80] ss:$8 sps:$4 sm:$0xff]   ;;  %2103 = vmatprep.subr.bf16.mxu0 %v3016_v44 }
 0x15b   : > { %2104 = vmatpush1.bf16.msra.mxu0 %v3014_v47 }
 0x15c   : > { %2105 = vmatprep.subr.bf16.mxu0 %v3019_v51 }
 0x161   : > { %1227 = vmatmul.mubr.bf16.gmra.mrb[72].mxu1 %v3820_v52  ;;  %v3017_v52 = vld [vmem:[%s3682_s4 + $0x90] ss:$8 sps:$4 sm:$0xff]  }
 0x162   : > { %1236 = vmatprep.mubr.bf16.mxu1 %v3825_v55  ;;  %2106 = vmatpush1.bf16.msra.mxu0 %v3017_v52  ;;  %v3025_v55 = vld [vmem:[%s3682_s4 + $0xb4] ss:$8 sps:$4 sm:$0xff]  }
 0x163   : > { %2107 = vmatprep.subr.bf16.mxu0 %v3022_v53 }
 0x166   : > { %2108 = vmatpush1.bf16.msra.mxu0 %v3020_v54 }
 0x167   : > { %2109 = vmatprep.subr.bf16.mxu0 %v3025_v55 }
 0x169   : > { %1237 = vmatmul.mubr.bf16.gmra.mrb[76].mxu1 %v3836_v60  ;;  %v3029_v60 = vld [vmem:[%s3682_s4 + $0xd0] ss:$8 sps:$4 sm:$0xff]  }
 0x16a   : > { %1246 = vmatprep.mubr.bf16.mxu1 %v3841_v63  ;;  %2110 = vmatpush1.bf16.msra.mxu0 %v3023_v56  ;;  %v3037_v63 = vld [vmem:[%s3682_s4 + $0xf4] ss:$8 sps:$4 sm:$0xff]  }
 0x16b   : > { %2111 = vmatprep.subr.bf16.mxu0 %v3028_v57 }
 0x16e   : > { %2112 = vmatpush1.bf16.msra.mxu0 %v3026_v58 }
 0x16f   : > { %2113 = vmatprep.subr.bf16.mxu0 %v3031_v59 }
 0x171   : > { %1247 = vmatmul.mubr.bf16.gmra.mrb[80].mxu1 %v3852_v4 }
 0x172   : > { %1256 = vmatprep.mubr.bf16.mxu1 %v3857_v7  ;;  %2114 = vmatpush1.bf16.msra.mxu0 %v3029_v60 }
 0x173   : > { %2115 = vmatprep.subr.bf16.mxu0 %v3034_v61 }
 0x176   : > { %2116 = vmatpush1.bf16.msra.mxu0 %v3032_v62 }
 0x177   : > { %2117 = vmatprep.subr.bf16.mxu0 %v3037_v63 }
 0x179   : > { %1257 = vmatmul.mubr.bf16.gmra.mrb[84].mxu1 %v3868_v12 }
 0x17a   : > { %1266 = vmatprep.mubr.bf16.mxu1 %v3871_v16  ;;  %2118 = vmatpush1.bf16.msra.mxu0 %v3035_v0 }
 0x181   : > { %1267 = vmatmul.mubr.bf16.gmra.mrb[88].mxu1 %v3878_v22 }
 0x182   : > { %1276 = vmatprep.mubr.bf16.mxu1 %v3881_v25 }
 0x189   : > { %1277 = vmatmul.mubr.bf16.gmra.mrb[92].mxu1 %v3888_v30 }
 0x1a4   : > { %v3953_v1 = vpop.f32.mrb[0].mxu1  ;;  %v3955_v2 = vpop.f32.mrb[0].mxu0 }
 0x1a5   : > { %4476 = vst [vmem:[#allocation12_spill] sm:$0xff] %v3953_v1  ;;  %v3957_v3 = vpop.f32.mrb[1].mxu1  ;;  %v3959_v4 = vpop.f32.mrb[1].mxu0  ;;  %v2627_v32 = vmul.f32 -1.442695, %v3955_v2 }
 0x1a6   : > { %4477 = vst [vmem:[#allocation13_spill] sm:$0xff] %v3957_v3  ;;  %v3961_v5 = vpop.f32.mrb[2].mxu1  ;;  %v3963_v6 = vpop.f32.mrb[2].mxu0  ;;  %v2628_v36 = vmul.f32 -1.442695, %v3959_v4 }
 0x1a7   : > { %4478 = vst [vmem:[#allocation14_spill] sm:$0xff] %v3961_v5  ;;  %v3965_v7 = vpop.f32.mrb[3].mxu1  ;;  %v3967_v8 = vpop.f32.mrb[3].mxu0  ;;  %3038 = vpow2.f32 %v2627_v32  ;;  %v2629_v37 = vmul.f32 -1.442695, %v3963_v6 }
 0x1a8   : > { %4479 = vst [vmem:[#allocation15_spill] sm:$0xff] %v3965_v7  ;;  %v2630_v38 = vmul.f32 -1.442695, %v3967_v8  ;;  %3040 = vpow2.f32 %v2628_v36  ;;  %v2659_v35 = vmul.f32 -1.442695, %v3953_v1 }
 0x1a9   : > { %3042 = vpow2.f32 %v2629_v37  ;;  %v2660_v44 = vmul.f32 -1.442695, %v3957_v3  ;;  %v2661_v51 = vmul.f32 -1.442695, %v3961_v5  ;;  %v2662_v55 = vmul.f32 -1.442695, %v3965_v7 }
 0x1aa   : > { %3044 = vpow2.f32 %v2630_v38 }
 0x1ac   : > { %v3969_v9 = vpop.f32.mrb[4].mxu1  ;;  %v3971_v10 = vpop.f32.mrb[4].mxu0 }
 0x1ad   : > { %4480 = vst [vmem:[#allocation16_spill] sm:$0xff] %v3969_v9  ;;  %v3973_v11 = vpop.f32.mrb[5].mxu1  ;;  %v3975_v12 = vpop.f32.mrb[5].mxu0  ;;  %v2631_v42 = vmul.f32 -1.442695, %v3971_v10 }
 0x1ae   : > { %4481 = vst [vmem:[#allocation17_spill] sm:$0xff] %v3973_v11  ;;  %v3977_v13 = vpop.f32.mrb[6].mxu1  ;;  %v3979_v15 = vpop.f32.mrb[6].mxu0  ;;  %v2632_v49 = vmul.f32 -1.442695, %v3975_v12 }
 0x1af   : > { %v3981_v16 = vpop.f32.mrb[7].mxu1  ;;  %v3983_v18 = vpop.f32.mrb[7].mxu0  ;;  %3046 = vpow2.f32 %v2631_v42  ;;  %v2633_v40 = vmul.f32 -1.442695, %v3979_v15  ;;  %v2663_v57 = vmul.f32 -1.442695, %v3969_v9 }
 0x1b0   : > { %3048 = vpow2.f32 %v2632_v49  ;;  %v2634_v47 = vmul.f32 -1.442695, %v3983_v18 }
 0x1b1   : > { %3050 = vpow2.f32 %v2659_v35  ;;  %v3039_v54 = vpop.eup %3038 }
 0x1b2   : > { %3052 = vpow2.f32 %v2633_v40  ;;  %v3041_v60 = vpop.eup %3040  ;;  %v1479_v63 = vadd.f32 1.0, %v3039_v54 }
 0x1b3   : > { %3054 = vpow2.f32 %v2660_v44  ;;  %v3043_v32 = vpop.eup %3042  ;;  %v1480_v42 = vadd.f32 1.0, %v3041_v60 }
 0x1b4   : > { %v3985_v19 = vpop.f32.mrb[8].mxu1  ;;  %v3987_v20 = vpop.f32.mrb[8].mxu0  ;;  %3056 = vpow2.f32 %v2634_v47  ;;  %v1481_v40 = vadd.f32 1.0, %v3043_v32 }
 0x1b5   : > { %v3989_v21 = vpop.f32.mrb[9].mxu1  ;;  %v3993_v23 = vpop.f32.mrb[9].mxu0  ;;  %v2635_v61 = vmul.f32 -1.442695, %v3987_v20  ;;  %3058 = vpow2.f32 %v2661_v51 }
 0x1b6   : > { %v3991_v22 = vpop.f32.mrb[10].mxu1  ;;  %v3997_v25 = vpop.f32.mrb[10].mxu0  ;;  %3060 = vpow2.f32 %v2662_v55  ;;  %v2636_v36 = vmul.f32 -1.442695, %v3993_v23 }
 0x1b7   : > { %v3995_v24 = vpop.f32.mrb[11].mxu1  ;;  %v3999_v26 = vpop.f32.mrb[11].mxu0  ;;  %3062 = vpow2.f32 %v2663_v57  ;;  %v2637_v35 = vmul.f32 -1.442695, %v3997_v25 }
 0x1b8   : > { %v3045_v38 = vpop.eup %3044  ;;  %3064 = vpow2.f32 %v2635_v61 }
 0x1b9   : > { %v3047_v49 = vpop.eup %3046  ;;  %3066 = vrcp.f32 %v1479_v63  ;;  %v1482_v54 = vadd.f32 1.0, %v3045_v38  ;;  %v2638_v63 = vmul.f32 -1.442695, %v3999_v26 }
 0x1ba   : > { %v3049_v51 = vpop.eup %3048  ;;  %3068 = vpow2.f32 %v2636_v36  ;;  %v1483_v57 = vadd.f32 1.0, %v3047_v49 }
 0x1bb   : > { %3070 = vrcp.f32 %v1480_v42  ;;  %v1484_v36 = vadd.f32 1.0, %v3049_v51 }
 0x1bc   : > { %v4001_v27 = vpop.f32.mrb[12].mxu1  ;;  %v4003_v28 = vpop.f32.mrb[12].mxu0  ;;  %3072 = vpow2.f32 %v2637_v35 }
 0x1bd   : > { %v4005_v29 = vpop.f32.mrb[13].mxu1  ;;  %v4009_v31 = vpop.f32.mrb[13].mxu0  ;;  %3074 = vrcp.f32 %v1481_v40  ;;  %v2639_v42 = vmul.f32 -1.442695, %v4003_v28 }
 0x1be   : > { %v4007_v30 = vpop.f32.mrb[14].mxu1  ;;  %v4014_v34 = vpop.f32.mrb[14].mxu0  ;;  %3076 = vrcp.f32 %v1482_v54 }
 0x1bf   : > { %v4012_v33 = vpop.f32.mrb[15].mxu1  ;;  %v4016_v17 = vpop.f32.mrb[15].mxu0  ;;  %3078 = vrcp.f32 %v1483_v57  ;;  %v2641_v9 = vmul.f32 -1.442695, %v4014_v34 }
 0x1c0   : > { %4482 = vst [vmem:[#allocation18_spill] sm:$0xff] %v4012_v33  ;;  %3080 = vpow2.f32 %v2638_v63  ;;  %v2664_v63 = vmul.f32 -1.442695, %v3973_v11 }
 0x1c4   : > { %v4021_v39 = vpop.f32.mrb[16].mxu1  ;;  %v4023_v41 = vpop.f32.mrb[16].mxu0 }
 0x1c5   : > { %4483 = vst [vmem:[#allocation19_spill] sm:$0xff] %v4021_v39  ;;  %v4026_v43 = vpop.f32.mrb[17].mxu1  ;;  %v4028_v45 = vpop.f32.mrb[17].mxu0  ;;  %v2643_v11 = vmul.f32 -1.442695, %v4023_v41 }
 0x1c6   : > { %4484 = vst [vmem:[#allocation20_spill] sm:$0xff] %v4026_v43  ;;  %v4030_v46 = vpop.f32.mrb[18].mxu1  ;;  %v4032_v48 = vpop.f32.mrb[18].mxu0 }
 0x1c7   : > { %4485 = vst [vmem:[#allocation21_spill] sm:$0xff] %v4030_v46  ;;  %v4035_v50 = vpop.f32.mrb[19].mxu1  ;;  %v4037_v14 = vpop.f32.mrb[19].mxu0 }
 0x1c8   : > { %4486 = vst [vmem:[#allocation22_spill] sm:$0xff] %v4035_v50 }
 0x1cc   : > { %v4044_v52 = vpop.f32.mrb[20].mxu1  ;;  %v4046_v53 = vpop.f32.mrb[20].mxu0 }
 0x1cd   : > { %4487 = vst [vmem:[#allocation23_spill] sm:$0xff] %v4044_v52  ;;  %v4049_v56 = vpop.f32.mrb[21].mxu1  ;;  %v4054_v59 = vpop.f32.mrb[21].mxu0 }
 0x1ce   : > { %4488 = vst [vmem:[#allocation24_spill] sm:$0xff] %v4049_v56  ;;  %v4052_v58 = vpop.f32.mrb[22].mxu1  ;;  %v4059_v0 = vpop.f32.mrb[22].mxu0 }
 0x1cf   : > { %4489 = vst [vmem:[#allocation25_spill] sm:$0xff] %v4052_v58  ;;  %v4057_v62 = vpop.f32.mrb[23].mxu1  ;;  %v4062_v37 = vpop.f32.mrb[23].mxu0 }
 0x1d0   : > { %4490 = vst [vmem:[#allocation26_spill] sm:$0xff] %v4057_v62  ;;  %v4071_v62 = vpop.eup %3050  ;;  %3082 = vrcp.f32 %v1484_v36 }
 0x1d1   : > { %v3053_v58 = vpop.eup %3052  ;;  %3084 = vpow2.f32 %v2639_v42 }
 0x1d2   : > { %v1485_v35 = vadd.f32 1.0, %v3053_v58 }
 0x1d4   : > { %v4065_v44 = vpop.f32.mrb[24].mxu1  ;;  %v4067_v47 = vpop.f32.mrb[24].mxu0 }
 0x1d5   : > { %4491 = vst [vmem:[#allocation27_spill] sm:$0xff] %v4065_v44  ;;  %v4069_v55 = vpop.f32.mrb[25].mxu1  ;;  %v4075_v61 = vpop.f32.mrb[25].mxu0 }
 0x1d6   : > { %4492 = vst [vmem:[#allocation28_spill] sm:$0xff] %v4069_v55  ;;  %v4073_v60 = vpop.f32.mrb[26].mxu1  ;;  %v4080_v44 = vpop.eup %3054  ;;  %3086 = vrcp.f32 %v1485_v35 }
 0x1d7   : > { %4493 = vst [vmem:[#allocation29_spill] sm:$0xff] %v4073_v60  ;;  %v4078_v32 = vpop.f32.mrb[27].mxu1  ;;  %v4082_v38 = vpop.f32.mrb[26].mxu0 }
 0x1d8   : > { %4494 = vst [vmem:[#allocation30_spill] sm:$0xff] %v4078_v32  ;;  %v3057_v55 = vpop.eup %3056  ;;  %v4085_v49 = vpop.f32.mrb[27].mxu0  ;;  %v2640_v32 = vmul.f32 -1.442695, %v4009_v31 }
 0x1d9   : > { %4495 = vst [vmem:[#allocation31_spill] sm:$0xff] %v4085_v49  ;;  %v4087_v60 = vpop.eup %3058  ;;  %v1486_v40 = vadd.f32 1.0, %v3057_v55 }
 0x1da   : > { %v4089_v56 = vpop.eup %3060  ;;  %3088 = vpow2.f32 %v2640_v32  ;;  %v2644_v32 = vmul.f32 -1.442695, %v4028_v45 }
 0x1db   : > { %v4092_v52 = vpop.eup %3062  ;;  %3090 = vrcp.f32 %v1486_v40 }
 0x1dc   : > { %v4094_v51 = vpop.f32.mrb[28].mxu1  ;;  %v4096_v54 = vpop.f32.mrb[28].mxu0  ;;  %3092 = vpow2.f32 %v2641_v9 }
 0x1dd   : > { %4496 = vst [vmem:[#allocation32_spill] sm:$0xff] %v4094_v51  ;;  %4497 = vst [vmem:[#allocation33_spill] sm:$0xff] %v4096_v54  ;;  %v3065_v50 = vpop.eup %3064  ;;  %v4099_v7 = vpop.f32.mrb[29].mxu1  ;;  %v2642_v51 = vmul.f32 -1.442695, %v4016_v17  ;;  %3094 = vpow2.f32 %v2664_v63 }
 0x1de   : > { %4498 = vst [vmem:[#allocation34_spill] sm:$0xff] %v4099_v7  ;;  %v4101_v58 = vpop.f32.mrb[29].mxu0  ;;  %v3067_v57 = vpop.eup %3066  ;;  %v1487_v7 = vadd.f32 1.0, %v3065_v50 }
 0x1df   : > { %4499 = vst [vmem:[#allocation35_spill] sm:$0xff] %v4101_v58  ;;  %v4104_v5 = vpop.f32.mrb[30].mxu1  ;;  %v4106_v36 = vpop.f32.mrb[30].mxu0  ;;  %v1671_v39 = vmul.f32 %v3067_v57, %v3955_v2  ;;  %3096 = vpow2.f32 %v2642_v51 }
 0x1e0   : > { %4500 = vst [vmem:[#allocation36_spill] sm:$0xff] %v4104_v5  ;;  %4501 = vst [vmem:[#allocation37_spill] sm:$0xff] %v4106_v36  ;;  %v3069_v55 = vpop.eup %3068  ;;  %v4109_v3 = vpop.f32.mrb[31].mxu1  ;;  %3098 = vrcp.f32 %v1487_v7  ;;  %v2665_v36 = vmul.f32 -1.442695, %v3977_v13 }
 0x1e1   : > { %4502 = vst [vmem:[#allocation38_spill] sm:$0xff] %v4109_v3  ;;  %v4111_v42 = vpop.f32.mrb[31].mxu0  ;;  %v3071_v1 = vpop.eup %3070  ;;  %v1488_v5 = vadd.f32 1.0, %v3069_v55  ;;  %3100 = vpow2.f32 %v2643_v11 }
 0x1e2   : > { %4503 = vst [vmem:[#allocation39_spill] sm:$0xff] %v4111_v42  ;;  %v3073_v46 = vpop.eup %3072  ;;  %v1672_v3 = vmul.f32 %v3071_v1, %v3959_v4  ;;  %v2666_v1 = vmul.f32 -1.442695, %v3981_v16 }
 0x1e3   : > { %v3075_v35 = vpop.eup %3074  ;;  %v1489_v42 = vadd.f32 1.0, %v3073_v46  ;;  %3102 = vrcp.f32 %v1488_v5 }
 0x1e4   : > { %v3077_v43 = vpop.eup %3076  ;;  %v1128_v40 = vpop.f32.mrb[32].mxu1  ;;  %v1673_v9 = vmul.f32 %v3075_v35, %v3963_v6  ;;  %3104 = vpow2.f32 %v2644_v32  ;;  %v1511_v6 = vadd.f32 1.0, %v4071_v62  ;;  %v1512_v35 = vadd.f32 1.0, %v4080_v44 }
 0x1e5   : > { %v3079_v33 = vpop.eup %3078  ;;  %v1735_v63 = vmul.f32 %v1671_v39, %v1128_v40  ;;  %v1130_v55 = vpop.f32.mrb[33].mxu1  ;;  %v1674_v2 = vmul.f32 %v3077_v43, %v3967_v8  ;;  %3106 = vrcp.f32 %v1489_v42  ;;  %v1513_v44 = vadd.f32 1.0, %v4087_v60 }
 0x1e6   : > { %v3081_v50 = vpop.eup %3080  ;;  %v1736_v57 = vmul.f32 %v1672_v3, %v1130_v55  ;;  %v1132_v54 = vpop.f32.mrb[34].mxu1  ;;  %v1675_v32 = vmul.f32 %v3079_v33, %v3971_v10  ;;  %v1515_v60 = vadd.f32 1.0, %v4092_v52 }
 0x1e7   : > { %v3083_v58 = vpop.eup %3082  ;;  %v1490_v51 = vadd.f32 1.0, %v3081_v50  ;;  %v1737_v4 = vmul.f32 %v1673_v9, %v1132_v54  ;;  %v1134_v7 = vpop.f32.mrb[35].mxu1 }
 0x1e8   : > { %v3085_v49 = vpop.eup %3084  ;;  %v1738_v11 = vmul.f32 %v1674_v2, %v1134_v7  ;;  %v1676_v62 = vmul.f32 %v3083_v58, %v3975_v12  ;;  %v1514_v58 = vadd.f32 1.0, %v4089_v56 }
 0x1e9   : > { %v3087_v46 = vpop.eup %3086  ;;  %3108 = vrcp.f32 %v1490_v51  ;;  %v1863_v8 = vpack.c.bf16 %v1737_v4, %v1735_v63  ;;  %v1491_v3 = vadd.f32 1.0, %v3085_v49 }
 0x1ea   : > { %v3089_v39 = vpop.eup %3088  ;;  %3110 = vpow2.f32 %v2665_v36  ;;  %v1864_v43 = vpack.c.bf16 %v1738_v11, %v1736_v57  ;;  %v1677_v36 = vmul.f32 %v3087_v46, %v3979_v15 }
 0x1eb   : > { %v3091_v5 = vpop.eup %3090  ;;  %3112 = vpow2.f32 %v2666_v1  ;;  %v1492_v54 = vadd.f32 1.0, %v3089_v39  ;;  %v2645_v39 = vmul.f32 -1.442695, %v4032_v48 }
 0x1ec   : > { %v3093_v40 = vpop.eup %3092  ;;  %3114 = vrcp.f32 %v1511_v6  ;;  %v1138_v9 = vpop.f32.mrb[36].mxu1  ;;  %2119 = vmatprep.mubr.bf16.mxu0 %v1864_v43  ;;  %v1678_v10 = vmul.f32 %v3091_v5, %v3983_v18  ;;  %v2646_v43 = vmul.f32 -1.442695, %v4037_v14 }
 0x1ed   : > { %v3095_v50 = vpop.eup %3094  ;;  %v1493_v42 = vadd.f32 1.0, %v3093_v40  ;;  %3116 = vrcp.f32 %v1512_v35  ;;  %v1739_v49 = vmul.f32 %v1675_v32, %v1138_v9  ;;  %v1140_v63 = vpop.f32.mrb[37].mxu1  ;;  %2120 = vmatmul.mubr.bf16.vlgmr.msra.gmra.mrb[32].mxu0 %v1863_v8 }
 0x1ee   : > { %v3097_v55 = vpop.eup %3096  ;;  %3118 = vrcp.f32 %v1491_v3  ;;  %v1740_v51 = vmul.f32 %v1676_v62, %v1140_v63  ;;  %v1142_v57 = vpop.f32.mrb[38].mxu1  ;;  %v2667_v63 = vmul.f32 -1.442695, %v3985_v19 }
 0x1ef   : > { %v3099_v2 = vpop.eup %3098  ;;  %v1494_v33 = vadd.f32 1.0, %v3097_v55  ;;  %3120 = vrcp.f32 %v1492_v54  ;;  %v1741_v1 = vmul.f32 %v1677_v36, %v1142_v57  ;;  %v1144_v4 = vpop.f32.mrb[39].mxu1  ;;  %v1516_v54 = vadd.f32 1.0, %v3095_v50 }
 0x1f0   : > { %v3101_v12 = vpop.eup %3100  ;;  %3122 = vrcp.f32 %v1493_v42  ;;  %v1742_v15 = vmul.f32 %v1678_v10, %v1144_v4  ;;  %v1679_v56 = vmul.f32 %v3099_v2, %v3987_v20  ;;  %v2648_v10 = vmul.f32 -1.442695, %v4054_v59 }
 0x1f1   : > { %v3103_v7 = vpop.eup %3102  ;;  %3124 = vrcp.f32 %v1494_v33  ;;  %v1495_v6 = vadd.f32 1.0, %v3101_v12  ;;  %v1865_v11 = vpack.c.bf16 %v1741_v1, %v1739_v49 }
 0x1f2   : > { %v3105_v46 = vpop.eup %3104  ;;  %3126 = vrcp.f32 %v1513_v44  ;;  %v1866_v35 = vpack.c.bf16 %v1742_v15, %v1740_v51  ;;  %v1680_v52 = vmul.f32 %v3103_v7, %v3993_v23  ;;  %v2647_v44 = vmul.f32 -1.442695, %v4046_v53 }
 0x1f3   : > { %v3107_v18 = vpop.eup %3106  ;;  %3128 = vrcp.f32 %v1514_v58  ;;  %v1496_v5 = vadd.f32 1.0, %v3105_v46  ;;  %v2649_v58 = vmul.f32 -1.442695, %v4059_v0  ;;  %v2669_v7 = vmul.f32 -1.442695, %v3991_v22 }
 0x1f4   : > { %v3109_v8 = vpop.eup %3108  ;;  %3130 = vrcp.f32 %v1515_v60  ;;  %v1148_v40 = vpop.f32.mrb[40].mxu1  ;;  %2129 = vmatprep.mubr.bf16.mxu0 %v1866_v35  ;;  %v1681_v62 = vmul.f32 %v3107_v18, %v3997_v25 }
 0x1f5   : > { %v3111_v3 = vpop.eup %3110  ;;  %3132 = vrcp.f32 %v1495_v6  ;;  %v1743_v42 = vmul.f32 %v1679_v56, %v1148_v40  ;;  %v1150_v9 = vpop.f32.mrb[41].mxu1  ;;  %2130 = vmatmul.mubr.bf16.gmra.mrb[36].mxu0 %v1865_v11  ;;  %v1682_v20 = vmul.f32 %v3109_v8, %v3999_v26  ;;  %v2668_v26 = vmul.f32 -1.442695, %v3989_v21 }
 0x1f6   : > { %v3113_v32 = vpop.eup %3112  ;;  %3134 = vpow2.f32 %v2645_v39  ;;  %v1744_v23 = vmul.f32 %v1680_v52, %v1150_v9  ;;  %v1152_v36 = vpop.f32.mrb[42].mxu1  ;;  %v2650_v6 = vmul.f32 -1.442695, %v4062_v37  ;;  %v1517_v39 = vadd.f32 1.0, %v3111_v3 }
 0x1f7   : > { %v4135_v55 = vpop.eup %3114  ;;  %3136 = vrcp.f32 %v1496_v5  ;;  %v1745_v50 = vmul.f32 %v1681_v62, %v1152_v36  ;;  %v1154_v25 = vpop.f32.mrb[43].mxu1  ;;  %v2670_v3 = vmul.f32 -1.442695, %v3995_v24 }
 0x1f8   : > { %v4139_v49 = vpop.eup %3116  ;;  %3138 = vpow2.f32 %v2646_v43  ;;  %v1746_v33 = vmul.f32 %v1682_v20, %v1154_v25 }
 0x1f9   : > { %v3119_v2 = vpop.eup %3118  ;;  %3140 = vrcp.f32 %v1516_v54  ;;  %v1867_v57 = vpack.c.bf16 %v1745_v50, %v1743_v42 }
 0x1fa   : > { %v3121_v51 = vpop.eup %3120  ;;  %3142 = vpow2.f32 %v2647_v44  ;;  %v1868_v1 = vpack.c.bf16 %v1746_v33, %v1744_v23  ;;  %v1683_v60 = vmul.f32 %v3119_v2, %v4003_v28  ;;  %v1518_v28 = vadd.f32 1.0, %v3113_v32 }
 0x1fb   : > { %v3123_v12 = vpop.eup %3122  ;;  %3144 = vpow2.f32 %v2667_v63  ;;  %v1684_v46 = vmul.f32 %v3121_v51, %v4009_v31  ;;  %v2672_v2 = vmul.f32 -1.442695, %v4005_v29 }
 0x1fc   : > { %v3125_v4 = vpop.eup %3124  ;;  %3146 = vpow2.f32 %v2648_v10  ;;  %v1158_v11 = vpop.f32.mrb[44].mxu1  ;;  %2139 = vmatprep.mubr.bf16.mxu0 %v1868_v1  ;;  %v1685_v35 = vmul.f32 %v3123_v12, %v4014_v34 }
 0x1fd   : > { %v4147_v15 = vpop.eup %3126  ;;  %3148 = vpow2.f32 %v2668_v26  ;;  %v1747_v8 = vmul.f32 %v1683_v60, %v1158_v11  ;;  %v1160_v56 = vpop.f32.mrb[45].mxu1  ;;  %2140 = vmatmul.mubr.bf16.gmra.mrb[40].mxu0 %v1867_v57  ;;  %v1686_v52 = vmul.f32 %v3125_v4, %v4016_v17  ;;  %v2671_v17 = vmul.f32 -1.442695, %v4001_v27 }
 0x1fe   : > { %v4151_v18 = vpop.eup %3128  ;;  %3150 = vpow2.f32 %v2649_v58  ;;  %v1748_v31 = vmul.f32 %v1684_v46, %v1160_v56  ;;  %v1162_v43 = vpop.f32.mrb[46].mxu1 }
 0x1ff   : > { %v4154_v5 = vpop.eup %3130  ;;  %3152 = vpow2.f32 %v2669_v7  ;;  %v1749_v54 = vmul.f32 %v1685_v35, %v1162_v43  ;;  %v1164_v62 = vpop.f32.mrb[47].mxu1 }
 0x200   : > { %v3133_v40 = vpop.eup %3132  ;;  %3154 = vpow2.f32 %v2650_v6  ;;  %v1750_v34 = vmul.f32 %v1686_v52, %v1164_v62  ;;  %v2651_v52 = vmul.f32 -1.442695, %v4067_v47  ;;  %v2652_v62 = vmul.f32 -1.442695, %v4075_v61 }
 0x201   : > { %v3135_v42 = vpop.eup %3134  ;;  %3156 = vrcp.f32 %v1517_v39  ;;  %v1869_v44 = vpack.c.bf16 %v1749_v54, %v1747_v8  ;;  %v1687_v63 = vmul.f32 %v3133_v40, %v4023_v41  ;;  %v2673_v41 = vmul.f32 -1.442695, %v4007_v30 }
 0x202   : > { %v3137_v9 = vpop.eup %3136  ;;  %v1497_v20 = vadd.f32 1.0, %v3135_v42  ;;  %3158 = vrcp.f32 %v1518_v28  ;;  %v1870_v32 = vpack.c.bf16 %v1750_v34, %v1748_v31 }
 0x203   : > { %v3139_v23 = vpop.eup %3138  ;;  %v1688_v10 = vmul.f32 %v3137_v9, %v4028_v45 }
 0x204   : > { %v4159_v36 = vpop.eup %3140  ;;  %3160 = vrcp.f32 %v1497_v20  ;;  %v1498_v50 = vadd.f32 1.0, %v3139_v23  ;;  %v1168_v33 = vpop.f32.mrb[48].mxu1  ;;  %2149 = vmatprep.mubr.bf16.mxu0 %v1870_v32 }
 0x205   : > { %v3143_v25 = vpop.eup %3142  ;;  %3162 = vpow2.f32 %v2670_v3  ;;  %v4164_v57 = vmul.f32 %v1687_v63, %v1168_v33  ;;  %v1170_v12 = vpop.f32.mrb[49].mxu1  ;;  %2150 = vmatmul.mubr.bf16.gmra.mrb[44].mxu0 %v1869_v44  ;;  %v2653_v44 = vmul.f32 -1.442695, %v4082_v38 }
 0x206   : > { %v3145_v51 = vpop.eup %3144  ;;  %3164 = vrcp.f32 %v1498_v50  ;;  %v1499_v26 = vadd.f32 1.0, %v3143_v25  ;;  %v4167_v1 = vmul.f32 %v1688_v10, %v1170_v12  ;;  %v1172_v4 = vpop.f32.mrb[50].mxu1  ;;  %v4504_v25 = vld [vmem:[#allocation31_spill] sm:$0xff] }
 0x207   : > { %v3147_v58 = vpop.eup %3146  ;;  %3166 = vpow2.f32 %v2671_v17  ;;  %v1174_v45 = vpop.f32.mrb[51].mxu1  ;;  %v1519_v6 = vadd.f32 1.0, %v3145_v51 }
 0x208   : > { %v3149_v7 = vpop.eup %3148  ;;  %3168 = vrcp.f32 %v1499_v26  ;;  %v1500_v60 = vadd.f32 1.0, %v3147_v58  ;;  %v4505_v58 = vld [vmem:[#allocation33_spill] sm:$0xff] }
 0x209   : > { %v3151_v46 = vpop.eup %3150  ;;  %3170 = vpow2.f32 %v2672_v2  ;;  %v1520_v8 = vadd.f32 1.0, %v3149_v7  ;;  %v2654_v2 = vmul.f32 -1.442695, %v4504_v25 }
 0x20a   : > { %v3153_v11 = vpop.eup %3152  ;;  %3172 = vrcp.f32 %v1500_v60  ;;  %v1501_v39 = vadd.f32 1.0, %v3151_v46 }
 0x20b   : > { %v3155_v35 = vpop.eup %3154  ;;  %3174 = vpow2.f32 %v2673_v41  ;;  %v1521_v43 = vadd.f32 1.0, %v3153_v11  ;;  %v2655_v41 = vmul.f32 -1.442695, %v4505_v58 }
 0x20c   : > { %v4169_v56 = vpop.eup %3156  ;;  %3176 = vrcp.f32 %v1501_v39  ;;  %v1502_v28 = vadd.f32 1.0, %v3155_v35  ;;  %v1178_v40 = vpop.f32.mrb[52].mxu1 }
 0x20d   : > { %v4172_v31 = vpop.eup %3158  ;;  %3178 = vrcp.f32 %v1519_v6  ;;  %v1180_v42 = vpop.f32.mrb[53].mxu1 }
 0x20e   : > { %v3161_v54 = vpop.eup %3160  ;;  %3180 = vrcp.f32 %v1502_v28  ;;  %v1182_v9 = vpop.f32.mrb[54].mxu1  ;;  %v4508_v28 = vld [vmem:[#allocation39_spill] sm:$0xff] }
 0x20f   : > { %v3163_v3 = vpop.eup %3162  ;;  %3182 = vrcp.f32 %v1520_v8  ;;  %v1689_v34 = vmul.f32 %v3161_v54, %v4032_v48  ;;  %v1184_v23 = vpop.f32.mrb[55].mxu1 }
 0x210   : > { %v3165_v20 = vpop.eup %3164  ;;  %3184 = vpow2.f32 %v2651_v52  ;;  %v1522_v33 = vadd.f32 1.0, %v3163_v3 }
 0x211   : > { %v3167_v17 = vpop.eup %3166  ;;  %3186 = vrcp.f32 %v1521_v43  ;;  %v1690_v32 = vmul.f32 %v3165_v20, %v4037_v14  ;;  %v1753_v63 = vmul.f32 %v1689_v34, %v1172_v4  ;;  %v4506_v4 = vld [vmem:[#allocation35_spill] sm:$0xff] }
 0x212   : > { %v3169_v50 = vpop.eup %3168  ;;  %3188 = vpow2.f32 %v2652_v62  ;;  %v2656_v60 = vmul.f32 -1.442695, %v4506_v4 }
 0x213   : > { %v4179_v10 = vpop.eup %3170  ;;  %v1691_v48 = vmul.f32 %v3169_v50, %v4046_v53  ;;  %v1871_v51 = vpack.c.bf16 %v1753_v63, %v4164_v57  ;;  %v1754_v26 = vmul.f32 %v1690_v32, %v1174_v45  ;;  %3190 = vpow2.f32 %v2653_v44  ;;  %v4507_v53 = vld [vmem:[#allocation37_spill] sm:$0xff] }
 0x214   : > { %v3173_v12 = vpop.eup %3172  ;;  %v4189_v11 = vpop.f32.mrb[56].mxu1  ;;  %3192 = vpow2.f32 %v2654_v2  ;;  %v2657_v57 = vmul.f32 -1.442695, %v4507_v53  ;;  %v4510_v2 = vld [vmem:[#allocation19_spill] sm:$0xff] }
 0x215   : > { %v4184_v7 = vpop.eup %3174  ;;  %v1692_v14 = vmul.f32 %v3173_v12, %v4054_v59  ;;  %v1872_v46 = vpack.c.bf16 %v1754_v26, %v4167_v1  ;;  %v1755_v6 = vmul.f32 %v1691_v48, %v1178_v40  ;;  %v4192_v45 = vpop.f32.mrb[57].mxu1  ;;  %3194 = vrcp.f32 %v1522_v33  ;;  %v4511_v26 = vld [vmem:[#allocation20_spill] sm:$0xff] }
 0x216   : > { %v3177_v39 = vpop.eup %3176  ;;  %v2658_v59 = vmul.f32 -1.442695, %v4508_v28  ;;  %v4198_v43 = vpop.f32.mrb[58].mxu1  ;;  %v1523_v40 = vadd.f32 1.0, %v3167_v17  ;;  %3196 = vpow2.f32 %v2655_v41  ;;  %v2675_v33 = vmul.f32 -1.442695, %v4510_v2 }
 0x217   : > { %v4194_v35 = vpop.eup %3178  ;;  %v1693_v8 = vmul.f32 %v3177_v39, %v4059_v0  ;;  %2159 = vmatprep.mubr.bf16.mxu0 %v1872_v46  ;;  %v1756_v52 = vmul.f32 %v1692_v14, %v1180_v42  ;;  %v4200_v54 = vpop.f32.mrb[59].mxu1  ;;  %3198 = vpow2.f32 %v2656_v60  ;;  %v4509_v0 = vld [vmem:[#allocation18_spill] sm:$0xff]  ;;  %v2676_v12 = vmul.f32 -1.442695, %v4511_v26  ;;  %v4512_v46 = vld [vmem:[#allocation21_spill] sm:$0xff] }
 0x218   : > { %v3181_v1 = vpop.eup %3180  ;;  %2160 = vmatmul.mubr.bf16.gmra.mrb[48].mxu0 %v1871_v51  ;;  %v2674_v44 = vmul.f32 -1.442695, %v4509_v0  ;;  %3200 = vpow2.f32 %v2657_v57 }
 0x219   : > { %v4202_v62 = vpop.eup %3182  ;;  %v1694_v3 = vmul.f32 %v3181_v1, %v4062_v37  ;;  %v1757_v34 = vmul.f32 %v1693_v8, %v1182_v9  ;;  %3202 = vpow2.f32 %v2658_v59 }
 0x21a   : > { %v3185_v20 = vpop.eup %3184  ;;  %3204 = vrcp.f32 %v1523_v40  ;;  %v4514_v40 = vld [vmem:[#allocation13_spill] sm:$0xff] }
 0x21b   : > { %v4206_v32 = vpop.eup %3186  ;;  %v1503_v42 = vadd.f32 1.0, %v3185_v20  ;;  %v1873_v63 = vpack.c.bf16 %v1757_v34, %v1755_v6  ;;  %v1758_v17 = vmul.f32 %v1694_v3, %v1184_v23  ;;  %v2677_v6 = vmul.f32 -1.442695, %v4512_v46  ;;  %v4515_v20 = vld [vmem:[#allocation14_spill] sm:$0xff] }
 0x21c   : > { %v3189_v50 = vpop.eup %3188  ;;  %v4209_v37 = vpop.f32.mrb[60].mxu1  ;;  %v1704_v3 = vmul.f32 %v4139_v49, %v4514_v40 }
 0x21d   : > { %3206 = vrcp.f32 %v1503_v42  ;;  %v1504_v48 = vadd.f32 1.0, %v3189_v50  ;;  %v1874_v51 = vpack.c.bf16 %v1758_v17, %v1756_v52  ;;  %v3191_v9 = vpop.eup %3190  ;;  %v4212_v41 = vpop.f32.mrb[61].mxu1  ;;  %v4513_v52 = vld [vmem:[#allocation12_spill] sm:$0xff]  ;;  %v4516_v42 = vld [vmem:[#allocation15_spill] sm:$0xff] }
 0x21e   : > { %3208 = vpow2.f32 %v2674_v44  ;;  %v1505_v14 = vadd.f32 1.0, %v3191_v9  ;;  %v4214_v60 = vpop.f32.mrb[62].mxu1  ;;  %v3193_v23 = vpop.eup %3192  ;;  %v1703_v1 = vmul.f32 %v4135_v55, %v4513_v52  ;;  %v1705_v44 = vmul.f32 %v4147_v15, %v4515_v20  ;;  %v4519_v15 = vld [vmem:[#allocation22_spill] sm:$0xff] }
 0x21f   : > { %3210 = vrcp.f32 %v1504_v48  ;;  %2169 = vmatprep.mubr.bf16.mxu0 %v1874_v51  ;;  %v4217_v39 = vpop.f32.mrb[63].mxu1  ;;  %v4219_v57 = vpop.eup %3194  ;;  %v1506_v8 = vadd.f32 1.0, %v3193_v23  ;;  %v4518_v51 = vld [vmem:[#allocation17_spill] sm:$0xff] }
 0x220   : > { %3212 = vpow2.f32 %v2675_v33  ;;  %2170 = vmatmul.mubr.bf16.gmra.mrb[52].mxu0 %v1873_v63  ;;  %v3197_v59 = vpop.eup %3196  ;;  %v1706_v63 = vmul.f32 %v4151_v18, %v4516_v42  ;;  %v4517_v33 = vld [vmem:[#allocation16_spill] sm:$0xff]  ;;  %v4233_v55 = vmul.f32 %v4159_v36, %v4518_v51  ;;  %v4522_v42 = vld [vmem:[#allocation25_spill] sm:$0xff] }
 0x221   : > { %3214 = vrcp.f32 %v1505_v14  ;;  %v3199_v34 = vpop.eup %3198  ;;  %v1507_v17 = vadd.f32 1.0, %v3197_v59  ;;  %v1707_v48 = vmul.f32 %v4154_v5, %v4517_v33  ;;  %v2678_v14 = vmul.f32 -1.442695, %v4519_v15  ;;  %v4520_v59 = vld [vmem:[#allocation23_spill] sm:$0xff]  ;;  %v4523_v33 = vld [vmem:[#allocation26_spill] sm:$0xff] }
 0x222   : > { %3216 = vpow2.f32 %v2676_v12  ;;  %v3201_v50 = vpop.eup %3200  ;;  %v1508_v49 = vadd.f32 1.0, %v3199_v34  ;;  %v4237_v12 = vmul.f32 %v4169_v56, %v3977_v13  ;;  %v2679_v5 = vmul.f32 -1.442695, %v4520_v59  ;;  %v4521_v34 = vld [vmem:[#allocation24_spill] sm:$0xff] }
 0x223   : > { %3218 = vrcp.f32 %v1506_v8  ;;  %v3203_v9 = vpop.eup %3202  ;;  %v1509_v18 = vadd.f32 1.0, %v3201_v50  ;;  %v2680_v20 = vmul.f32 -1.442695, %v4521_v34  ;;  %v2681_v13 = vmul.f32 -1.442695, %v4522_v42 }
 0x224   : > { %3220 = vpow2.f32 %v2677_v6  ;;  %v1208_v23 = vpop.f32.mrb[64].mxu1  ;;  %v4240_v8 = vpop.eup %3204  ;;  %v1510_v52 = vadd.f32 1.0, %v3203_v9  ;;  %v2682_v51 = vmul.f32 -1.442695, %v4523_v33  ;;  %v1525_v34 = vadd.f32 1.0, %v4184_v7 }
 0x225   : > { %3222 = vrcp.f32 %v1507_v17  ;;  %v4243_v36 = vmul.f32 %v1703_v1, %v1208_v23  ;;  %v1210_v6 = vpop.f32.mrb[65].mxu1  ;;  %v1524_v23 = vadd.f32 1.0, %v4179_v10 }
 0x226   : > { %3224 = vrcp.f32 %v1508_v49  ;;  %v4247_v56 = vmul.f32 %v1704_v3, %v1210_v6  ;;  %v1212_v17 = vpop.f32.mrb[66].mxu1 }
 0x227   : > { %v3207_v40 = vpop.eup %3206  ;;  %3226 = vrcp.f32 %v1509_v18  ;;  %v4251_v49 = vmul.f32 %v1705_v44, %v1212_v17  ;;  %v1214_v1 = vpop.f32.mrb[67].mxu1 }
 0x228   : > { %v3209_v50 = vpop.eup %3208  ;;  %v1695_v15 = vmul.f32 %v3207_v40, %v4067_v47  ;;  %3228 = vrcp.f32 %v1510_v52  ;;  %v4255_v42 = vmul.f32 %v1706_v63, %v1214_v1  ;;  %v4524_v40 = vld [vmem:[#allocation27_spill] sm:$0xff]  ;;  %v4525_v63 = vld [vmem:[#allocation28_spill] sm:$0xff]  ;;  %v4527_v1 = vld [vmem:[#allocation30_spill] sm:$0xff] }
 0x229   : > { %v3211_v9 = vpop.eup %3210  ;;  %3230 = vpow2.f32 %v2678_v14  ;;  %v1526_v52 = vadd.f32 1.0, %v3209_v50  ;;  %v2683_v17 = vmul.f32 -1.442695, %v4524_v40  ;;  %v2684_v14 = vmul.f32 -1.442695, %v4525_v63  ;;  %v4526_v50 = vld [vmem:[#allocation29_spill] sm:$0xff] }
 0x22a   : > { %v3213_v3 = vpop.eup %3212  ;;  %3232 = vpow2.f32 %v2679_v5  ;;  %v1696_v18 = vmul.f32 %v3211_v9, %v4075_v61  ;;  %v1759_v6 = vmul.f32 %v1695_v15, %v4189_v11  ;;  %v1710_v15 = vmul.f32 %v4172_v31, %v3981_v16 }
 0x22b   : > { %v3215_v44 = vpop.eup %3214  ;;  %3234 = vpow2.f32 %v2680_v20  ;;  %v2685_v20 = vmul.f32 -1.442695, %v4526_v50  ;;  %v4271_v9 = vmul.f32 -1.442695, %v4527_v1 }
 0x22c   : > { %v3217_v7 = vpop.eup %3216  ;;  %3236 = vpow2.f32 %v2681_v13  ;;  %v1697_v5 = vmul.f32 %v3215_v44, %v4082_v38  ;;  %v1760_v61 = vmul.f32 %v1696_v18, %v4192_v45  ;;  %v1218_v47 = vpop.f32.mrb[68].mxu1  ;;  %v1527_v44 = vadd.f32 1.0, %v3213_v3 }
 0x22d   : > { %v3219_v11 = vpop.eup %3218  ;;  %3238 = vrcp.f32 %v1524_v23  ;;  %v4275_v38 = vmul.f32 %v1707_v48, %v1218_v47  ;;  %v1220_v45 = vpop.f32.mrb[69].mxu1  ;;  %v1528_v16 = vadd.f32 1.0, %v3217_v7 }
 0x22e   : > { %v3221_v10 = vpop.eup %3220  ;;  %3240 = vrcp.f32 %v1525_v34  ;;  %v1698_v13 = vmul.f32 %v3219_v11, %v4504_v25  ;;  %v1761_v63 = vmul.f32 %v1697_v5, %v4198_v43  ;;  %v4278_v31 = vmul.f32 %v4233_v55, %v1220_v45  ;;  %v1222_v23 = vpop.f32.mrb[70].mxu1 }
 0x22f   : > { %v3223_v18 = vpop.eup %3222  ;;  %3242 = vrcp.f32 %v1526_v52  ;;  %v4283_v25 = vmul.f32 %v4237_v12, %v1222_v23  ;;  %v1224_v43 = vpop.f32.mrb[71].mxu1  ;;  %v1529_v47 = vadd.f32 1.0, %v3221_v10 }
 0x230   : > { %v3225_v1 = vpop.eup %3224  ;;  %v1699_v50 = vmul.f32 %v3223_v18, %v4505_v58  ;;  %v1875_v40 = vpack.c.bf16 %v1761_v63, %v1759_v6  ;;  %v1762_v34 = vmul.f32 %v1698_v13, %v4200_v54  ;;  %3244 = vpow2.f32 %v2682_v51 }
 0x231   : > { %v3227_v48 = vpop.eup %3226  ;;  %v1700_v3 = vmul.f32 %v3225_v1, %v4506_v4  ;;  %v4286_v52 = vmul.f32 %v1710_v15, %v1224_v43  ;;  %v1881_v54 = vpack.c.bf16 %v4283_v25, %v4275_v38  ;;  %3246 = vrcp.f32 %v1527_v44  ;;  %v4528_v44 = vld [vmem:[#allocation32_spill] sm:$0xff] }
 0x232   : > { %v3229_v55 = vpop.eup %3228  ;;  %v1701_v7 = vmul.f32 %v3227_v48, %v4507_v53  ;;  %v1876_v5 = vpack.c.bf16 %v1762_v34, %v1760_v61  ;;  %v1763_v58 = vmul.f32 %v1699_v50, %v4209_v37  ;;  %v1711_v63 = vmul.f32 %v4194_v35, %v3985_v19  ;;  %v4529_v34 = vld [vmem:[#allocation34_spill] sm:$0xff] }
 0x233   : > { %v3231_v6 = vpop.eup %3230  ;;  %v1702_v12 = vmul.f32 %v3229_v55, %v4508_v28  ;;  %v1764_v10 = vmul.f32 %v1700_v3, %v4212_v41  ;;  %v1882_v4 = vpack.c.bf16 %v4286_v52, %v4278_v31  ;;  %v1712_v53 = vmul.f32 %v4202_v62, %v3989_v21 }
 0x234   : > { %v3233_v51 = vpop.eup %3232  ;;  %3248 = vrcp.f32 %v1528_v16  ;;  %2179 = vmatprep.mubr.bf16.mxu0 %v1876_v5  ;;  %v1765_v37 = vmul.f32 %v1701_v7, %v4214_v60  ;;  %v1713_v28 = vmul.f32 %v4206_v32, %v3991_v22  ;;  %v1714_v41 = vmul.f32 %v4219_v57, %v3995_v24  ;;  %v1228_v15 = vpop.f32.mrb[72].mxu1  ;;  %v4531_v7 = vld [vmem:[#allocation38_spill] sm:$0xff] }
 0x235   : > { %v3235_v61 = vpop.eup %3234  ;;  %3250 = vrcp.f32 %v1529_v47  ;;  %2180 = vmatmul.mubr.bf16.gmra.mrb[56].mxu0 %v1875_v40  ;;  %v1766_v11 = vmul.f32 %v1702_v12, %v4217_v39  ;;  %v1530_v35 = vadd.f32 1.0, %v3231_v6  ;;  %v4306_v62 = vmul.f32 %v1711_v63, %v1228_v15  ;;  %v1230_v50 = vpop.f32.mrb[73].mxu1 }
 0x236   : > { %v3237_v19 = vpop.eup %3236  ;;  %3252 = vpow2.f32 %v2683_v17  ;;  %v1877_v21 = vpack.c.bf16 %v1765_v37, %v1763_v58  ;;  %v1531_v1 = vadd.f32 1.0, %v3233_v51  ;;  %v4308_v22 = vmul.f32 %v1712_v53, %v1230_v50  ;;  %v1232_v32 = vpop.f32.mrb[74].mxu1 }
 0x237   : > { %v3239_v60 = vpop.eup %3238  ;;  %3254 = vpow2.f32 %v2684_v14  ;;  %v1878_v13 = vpack.c.bf16 %v1766_v11, %v1764_v10  ;;  %v1532_v57 = vadd.f32 1.0, %v3235_v61  ;;  %v4310_v40 = vmul.f32 %v1713_v28, %v1232_v32  ;;  %v1234_v39 = vpop.f32.mrb[75].mxu1 }
 0x238   : > { %v3241_v24 = vpop.eup %3240  ;;  %3256 = vpow2.f32 %v2685_v20  ;;  %v1533_v18 = vadd.f32 1.0, %v3237_v19  ;;  %v4313_v17 = vmul.f32 %v1714_v41, %v1234_v39  ;;  %v2687_v14 = vmul.f32 -1.442695, %v4528_v44 }
 0x239   : > { %v3243_v45 = vpop.eup %3242  ;;  %3258 = vpow2.f32 %v4271_v9  ;;  %2189 = vmatprep.mubr.bf16.mxu0 %v1878_v13  ;;  %v1883_v16 = vpack.c.bf16 %v4310_v40, %v4306_v62  ;;  %v2688_v20 = vmul.f32 -1.442695, %v4529_v34  ;;  %v1715_v48 = vmul.f32 %v4240_v8, %v4001_v27  ;;  %v4530_v9 = vld [vmem:[#allocation36_spill] sm:$0xff] }
 0x23a   : > { %3260 = vrcp.f32 %v1530_v35  ;;  %v3245_v23 = vpop.eup %3244  ;;  %v1884_v43 = vpack.c.bf16 %v4313_v17, %v4308_v22  ;;  %v2689_v47 = vmul.f32 -1.442695, %v4530_v9  ;;  %v1716_v55 = vmul.f32 %v3239_v60, %v4005_v29  ;;  %v4537_v17 = vld [vmem:[#allocation27_spill] sm:$0xff] }
 0x23b   : > { %3262 = vrcp.f32 %v1531_v1  ;;  %v3247_v3 = vpop.eup %3246  ;;  %v2690_v5 = vmul.f32 -1.442695, %v4531_v7  ;;  %v1717_v12 = vmul.f32 %v3241_v24, %v4007_v30  ;;  %v1534_v10 = vadd.f32 1.0, %v3245_v23  ;;  %v4534_v23 = vld [vmem:[#allocation22_spill] sm:$0xff] }
 0x23c   : > { %3264 = vrcp.f32 %v1532_v57  ;;  %v1238_v58 = vpop.f32.mrb[76].mxu1  ;;  %v4532_v51 = vpack.c.bf16 %v4255_v42, %v4247_v56  ;;  %v1718_v29 = vmul.f32 %v3243_v45, %v4509_v0  ;;  %v4533_v32 = vpack.c.bf16 %v4251_v49, %v4243_v36 }
 0x23d   : > { %3266 = vrcp.f32 %v1533_v18  ;;  %2190 = vmatmul.mubr.bf16.gmra.mrb[60].mxu0 %v1877_v21  ;;  %v4330_v27 = vmul.f32 %v1715_v48, %v1238_v58  ;;  %v1240_v8 = vpop.f32.mrb[77].mxu1  ;;  %v1719_v21 = vmul.f32 %v3247_v3, %v4510_v2 }
 0x23e   : > { %v3249_v6 = vpop.eup %3248  ;;  %3268 = vpow2.f32 %v2687_v14  ;;  %2199 = vmatprep.mubr.bf16.mxu0 %v4532_v51  ;;  %v4333_v53 = vmul.f32 %v1716_v55, %v1240_v8  ;;  %v1242_v37 = vpop.f32.mrb[78].mxu1 }
 0x23f   : > { %v3251_v63 = vpop.eup %3250  ;;  %3270 = vpow2.f32 %v2688_v20  ;;  %v4335_v28 = vmul.f32 %v1717_v12, %v1242_v37  ;;  %v1244_v30 = vpop.f32.mrb[79].mxu1  ;;  %v1720_v1 = vmul.f32 %v3249_v6, %v4511_v26 }
 0x240   : > { %v3253_v61 = vpop.eup %3252  ;;  %3272 = vpow2.f32 %v2689_v47  ;;  %v4337_v11 = vmul.f32 %v1718_v29, %v1244_v30  ;;  %v1721_v39 = vmul.f32 %v3251_v63, %v4512_v46  ;;  %v4536_v29 = vld [vmem:[#allocation25_spill] sm:$0xff] }
 0x241   : > { %v3255_v41 = vpop.eup %3254  ;;  %3274 = vpow2.f32 %v2690_v5  ;;  %v1885_v56 = vpack.c.bf16 %v4335_v28, %v4330_v27  ;;  %v1535_v0 = vadd.f32 1.0, %v3253_v61  ;;  %v1801_v27 = vld [vmem:[#allocation8 + $0x10] sm:$0xff] }
 0x242   : > { %v3257_v42 = vpop.eup %3256  ;;  %3276 = vrcp.f32 %v1534_v10  ;;  %v1886_v19 = vpack.c.bf16 %v4337_v11, %v4333_v53  ;;  %v1536_v50 = vadd.f32 1.0, %v3255_v41  ;;  %v4535_v10 = vld [vmem:[#allocation24_spill] sm:$0xff] }
 0x243   : > { %v3259_v15 = vpop.eup %3258  ;;  %v1537_v13 = vadd.f32 1.0, %v3257_v42  ;;  %3278 = vrcp.f32 %v1535_v0 }
 0x244   : > { %v3261_v35 = vpop.eup %3260  ;;  %v1248_v24 = vpop.f32.mrb[80].mxu1  ;;  %v1538_v45 = vadd.f32 1.0, %v3259_v15  ;;  %3280 = vrcp.f32 %v1536_v50 }
 0x245   : > { %v3263_v60 = vpop.eup %3262  ;;  %2200 = vmatmul.mubr.bf16.gmra.mrb[64].mxu0 %v4533_v32  ;;  %v4352_v18 = vmul.f32 %v1719_v21, %v1248_v24  ;;  %v1250_v2 = vpop.f32.mrb[81].mxu1  ;;  %v1722_v26 = vmul.f32 %v3261_v35, %v4534_v23  ;;  %3282 = vrcp.f32 %v1537_v13  ;;  %v4539_v32 = vld [vmem:[#allocation29_spill] sm:$0xff] }
 0x246   : > { %v3265_v57 = vpop.eup %3264  ;;  %2209 = vmatprep.mubr.bf16.mxu0 %v1882_v4  ;;  %v4355_v20 = vmul.f32 %v1720_v1, %v1250_v2  ;;  %v1252_v36 = vpop.f32.mrb[82].mxu1  ;;  %3284 = vrcp.f32 %v1538_v45  ;;  %v1723_v6 = vmul.f32 %v3263_v60, %v4520_v59  ;;  %v4538_v1 = vld [vmem:[#allocation28_spill] sm:$0xff]  ;;  %v4540_v45 = vld [vmem:[#allocation30_spill] sm:$0xff] }
 0x247   : > { %v3267_v14 = vpop.eup %3266  ;;  %v4357_v48 = vmul.f32 %v1721_v39, %v1252_v36  ;;  %v1254_v46 = vpop.f32.mrb[83].mxu1  ;;  %v1724_v51 = vmul.f32 %v3265_v57, %v4535_v10 }
 0x248   : > { %v3269_v49 = vpop.eup %3268  ;;  %v1786_v3 = vmul.f32 %v1722_v26, %v1254_v46  ;;  %v1725_v37 = vmul.f32 %v3267_v14, %v4536_v29 }
 0x249   : > { %v3271_v47 = vpop.eup %3270  ;;  %v1887_v52 = vpack.c.bf16 %v4357_v48, %v4352_v18  ;;  %v1539_v55 = vadd.f32 1.0, %v3269_v49  ;;  %v1803_v48 = vld [vmem:[#allocation8 + $0x20] sm:$0xff] }
 0x24a   : > { %v3273_v31 = vpop.eup %3272  ;;  %v1888_v5 = vpack.c.bf16 %v1786_v3, %v4355_v20  ;;  %v1540_v12 = vadd.f32 1.0, %v3271_v47 }
 0x24b   : > { %v3275_v4 = vpop.eup %3274  ;;  %v1541_v8 = vadd.f32 1.0, %v3273_v31  ;;  %3286 = vrcp.f32 %v1539_v55 }
 0x24c   : > { %v3277_v58 = vpop.eup %3276  ;;  %v1258_v63 = vpop.f32.mrb[84].mxu1  ;;  %v1542_v61 = vadd.f32 1.0, %v3275_v4  ;;  %3288 = vrcp.f32 %v1540_v12 }
 0x24d   : > { %2210 = vmatmul.mubr.bf16.gmra.mrb[68].mxu0 %v1881_v54  ;;  %v1787_v30 = vmul.f32 %v1723_v6, %v1258_v63  ;;  %v1260_v41 = vpop.f32.mrb[85].mxu1  ;;  %v1726_v59 = vmul.f32 %v3277_v58, %v4523_v33  ;;  %v3279_v38 = vpop.eup %3278  ;;  %3290 = vrcp.f32 %v1541_v8 }
 0x24e   : > { %2219 = vmatprep.mubr.bf16.mxu0 %v1884_v43  ;;  %v1788_v42 = vmul.f32 %v1724_v51, %v1260_v41  ;;  %v1262_v15 = vpop.f32.mrb[86].mxu1  ;;  %v3281_v54 = vpop.eup %3280  ;;  %3292 = vrcp.f32 %v1542_v61  ;;  %v1727_v43 = vmul.f32 %v3279_v38, %v4537_v17  ;;  %v1805_v41 = vld [vmem:[#allocation8 + $0x30] sm:$0xff] }
 0x24f   : > { %v1789_v0 = vmul.f32 %v1725_v37, %v1262_v15  ;;  %v1264_v35 = vpop.f32.mrb[87].mxu1  ;;  %v3283_v50 = vpop.eup %3282  ;;  %v1728_v13 = vmul.f32 %v3281_v54, %v4538_v1  ;;  %v1806_v15 = vld [vmem:[#allocation8 + $0x38] sm:$0xff] }
 0x250   : > { %v1790_v25 = vmul.f32 %v1726_v59, %v1264_v35  ;;  %v3285_v22 = vpop.eup %3284  ;;  %v1729_v24 = vmul.f32 %v3283_v50, %v4539_v32  ;;  %v1808_v50 = vld [vmem:[#allocation8 + $0x48] sm:$0xff]  ;;  %v1810_v1 = vld [vmem:[#allocation8 + $0x58] sm:$0xff] }
 0x251   : > { %v1889_v21 = vpack.c.bf16 %v1789_v0, %v1787_v30  ;;  %v1730_v2 = vmul.f32 %v3285_v22, %v4540_v45  ;;  %v1809_v22 = vld [vmem:[#allocation8 + $0x50] sm:$0xff]  ;;  %v1812_v45 = vld [vmem:[#allocation8 + $0x68] sm:$0xff] }
 0x252   : > { %v1890_v60 = vpack.c.bf16 %v1790_v25, %v1788_v42 }
 0x254   : > { %v1268_v33 = vpop.f32.mrb[88].mxu1 }
 0x255   : > { %2220 = vmatmul.mubr.bf16.gmra.mrb[72].mxu0 %v1883_v16  ;;  %v1791_v57 = vmul.f32 %v1727_v43, %v1268_v33  ;;  %v1270_v39 = vpop.f32.mrb[89].mxu1  ;;  %v3287_v36 = vpop.eup %3286 }
 0x256   : > { %2229 = vmatprep.mubr.bf16.mxu0 %v1886_v19  ;;  %v1792_v14 = vmul.f32 %v1728_v13, %v1270_v39  ;;  %v1272_v23 = vpop.f32.mrb[90].mxu1  ;;  %v3289_v46 = vpop.eup %3288  ;;  %v1731_v3 = vmul.f32 %v3287_v36, %v4528_v44  ;;  %v1811_v39 = vld [vmem:[#allocation8 + $0x60] sm:$0xff] }
 0x257   : > { %v1793_v26 = vmul.f32 %v1729_v24, %v1272_v23  ;;  %v1274_v20 = vpop.f32.mrb[91].mxu1  ;;  %v3291_v40 = vpop.eup %3290  ;;  %v1732_v53 = vmul.f32 %v3289_v46, %v4529_v34  ;;  %v1799_v34 = vld [vmem:[#allocation8] sm:$0xff] }
 0x258   : > { %v1794_v49 = vmul.f32 %v1730_v2, %v1274_v20  ;;  %v3293_v47 = vpop.eup %3292  ;;  %v1733_v19 = vmul.f32 %v3291_v40, %v4530_v9  ;;  %v1800_v9 = vld [vmem:[#allocation8 + $0x8] sm:$0xff]  ;;  %v1814_v20 = vld [vmem:[#allocation8 + $0x78] sm:$0xff] }
 0x259   : > { %v1891_v62 = vpack.c.bf16 %v1793_v26, %v1791_v57  ;;  %v1734_v55 = vmul.f32 %v3293_v47, %v4531_v7  ;;  %v1816_v47 = vld [vmem:[#allocation8 + $0x88] sm:$0xff] }
 0x25a   : > { %v1892_v16 = vpack.c.bf16 %v1794_v49, %v1792_v14  ;;  %v1813_v14 = vld [vmem:[#allocation8 + $0x70] sm:$0xff] }
 0x25c   : > { %v1278_v11 = vpop.f32.mrb[92].mxu1 }
 0x25d   : > { %2230 = vmatmul.mubr.bf16.gmra.mrb[76].mxu0 %v1885_v56  ;;  %v1795_v31 = vmul.f32 %v1731_v3, %v1278_v11  ;;  %v1280_v4 = vpop.f32.mrb[93].mxu1 }
 0x25e   : > { %2239 = vmatprep.mubr.bf16.mxu0 %v1888_v5  ;;  %v1796_v58 = vmul.f32 %v1732_v53, %v1280_v4  ;;  %v1282_v6 = vpop.f32.mrb[94].mxu1  ;;  %v1802_v5 = vld [vmem:[#allocation8 + $0x18] sm:$0xff]  ;;  %v1817_v53 = vld [vmem:[#allocation8 + $0x90] sm:$0xff] }
 0x25f   : > { %v1797_v12 = vmul.f32 %v1733_v19, %v1282_v6  ;;  %v1284_v10 = vpop.f32.mrb[95].mxu1 }
 0x260   : > { %v1798_v51 = vmul.f32 %v1734_v55, %v1284_v10  ;;  %v1819_v10 = vld [vmem:[#allocation8 + $0xa0] sm:$0xff] }
 0x261   : > { %v1893_v44 = vpack.c.bf16 %v1797_v12, %v1795_v31  ;;  %v1818_v31 = vld [vmem:[#allocation8 + $0x98] sm:$0xff] }
 0x262   : > { %v1894_v8 = vpack.c.bf16 %v1798_v51, %v1796_v58  ;;  %v1820_v51 = vld [vmem:[#allocation8 + $0xa8] sm:$0xff] }
 0x265   : > { %2240 = vmatmul.mubr.bf16.gmra.mrb[80].mxu0 %v1887_v52  ;;  %v1804_v52 = vld [vmem:[#allocation8 + $0x28] sm:$0xff] }
 0x266   : > { %2249 = vmatprep.mubr.bf16.mxu0 %v1890_v60 }
 0x26d   : > { %2250 = vmatmul.mubr.bf16.gmra.mrb[84].mxu0 %v1889_v21  ;;  %v1807_v21 = vld [vmem:[#allocation8 + $0x40] sm:$0xff] }
 0x26e   : > { %2259 = vmatprep.mubr.bf16.mxu0 %v1892_v16  ;;  %v1815_v16 = vld [vmem:[#allocation8 + $0x80] sm:$0xff] }
 0x275   : > { %2260 = vmatmul.mubr.bf16.gmra.mrb[88].mxu0 %v1891_v62 }
 0x276   : > { %2269 = vmatprep.mubr.bf16.mxu0 %v1894_v8  ;;  %v1821_v8 = vld [vmem:[#allocation8 + $0xb0] sm:$0xff] }
 0x27d   : > { %2270 = vmatmul.mubr.bf16.gmra.mrb[92].mxu0 %v1893_v44 }
 0x2c0   : > { %v2121_v7 = vpop.f32.mrb[32].mxu0 }
 0x2c1   : > { %v2280_v28 = vadd.f32 %v2121_v7, %v1799_v34  ;;  %v2123_v56 = vpop.f32.mrb[33].mxu0  ;;  %v1822_v7 = vld [vmem:[#allocation8 + $0xb8] sm:$0xff] }
 0x2c2   : > { %v2281_v63 = vadd.f32 %v2123_v56, %v1800_v9  ;;  %v2125_v29 = vpop.f32.mrb[34].mxu0 }
 0x2c3   : > { %2344 = vst [vmem:[#allocation8] sm:$0xff] %v2280_v28  ;;  %v2282_v37 = vadd.f32 %v2125_v29, %v1801_v27  ;;  %v2127_v61 = vpop.f32.mrb[35].mxu0  ;;  %v1823_v29 = vld [vmem:[#allocation8 + $0xc0] sm:$0xff] }
 0x2c4   : > { %2345 = vst [vmem:[#allocation8 + $0x8] sm:$0xff] %v2281_v63  ;;  %v2283_v18 = vadd.f32 %v2127_v61, %v1802_v5 }
 0x2c5   : > { %2346 = vst [vmem:[#allocation8 + $0x10] sm:$0xff] %v2282_v37  ;;  %v1824_v37 = vld [vmem:[#allocation8 + $0xc8] sm:$0xff] }
 0x2c6   : > { %2347 = vst [vmem:[#allocation8 + $0x18] sm:$0xff] %v2283_v18  ;;  %v1825_v18 = vld [vmem:[#allocation8 + $0xd0] sm:$0xff] }
 0x2c8   : > { %v2131_v30 = vpop.f32.mrb[36].mxu0 }
 0x2c9   : > { %v2284_v59 = vadd.f32 %v2131_v30, %v1803_v48  ;;  %v2133_v42 = vpop.f32.mrb[37].mxu0  ;;  %v1826_v30 = vld [vmem:[#allocation8 + $0xd8] sm:$0xff] }
 0x2ca   : > { %v2285_v0 = vadd.f32 %v2133_v42, %v1804_v52  ;;  %v2135_v35 = vpop.f32.mrb[38].mxu0 }
 0x2cb   : > { %2348 = vst [vmem:[#allocation8 + $0x20] sm:$0xff] %v2284_v59  ;;  %v2286_v38 = vadd.f32 %v2135_v35, %v1805_v41  ;;  %v2137_v25 = vpop.f32.mrb[39].mxu0  ;;  %v1827_v35 = vld [vmem:[#allocation8 + $0xe0] sm:$0xff] }
 0x2cc   : > { %2349 = vst [vmem:[#allocation8 + $0x28] sm:$0xff] %v2285_v0  ;;  %v2287_v54 = vadd.f32 %v2137_v25, %v1806_v15 }
 0x2cd   : > { %2350 = vst [vmem:[#allocation8 + $0x30] sm:$0xff] %v2286_v38  ;;  %v1828_v38 = vld [vmem:[#allocation8 + $0xe8] sm:$0xff] }
 0x2ce   : > { %2351 = vst [vmem:[#allocation8 + $0x38] sm:$0xff] %v2287_v54  ;;  %v1829_v54 = vld [vmem:[#allocation8 + $0xf0] sm:$0xff] }
 0x2d0   : > { %v2141_v60 = vpop.f32.mrb[40].mxu0 }
 0x2d1   : > { %v2288_v17 = vadd.f32 %v2141_v60, %v1807_v21  ;;  %v2143_v43 = vpop.f32.mrb[41].mxu0  ;;  %v1830_v60 = vld [vmem:[#allocation8 + $0xf8] sm:$0xff] }
 0x2d2   : > { %v2289_v13 = vadd.f32 %v2143_v43, %v1808_v50  ;;  %v2145_v33 = vpop.f32.mrb[42].mxu0 }
 0x2d3   : > { %2352 = vst [vmem:[#allocation8 + $0x40] sm:$0xff] %v2288_v17  ;;  %v2290_v32 = vadd.f32 %v2145_v33, %v1809_v22  ;;  %v2147_v24 = vpop.f32.mrb[43].mxu0  ;;  %v1831_v33 = vld [vmem:[#allocation8 + $0x100] sm:$0xff] }
 0x2d4   : > { %2353 = vst [vmem:[#allocation8 + $0x48] sm:$0xff] %v2289_v13  ;;  %v2291_v57 = vadd.f32 %v2147_v24, %v1810_v1 }
 0x2d5   : > { %2354 = vst [vmem:[#allocation8 + $0x50] sm:$0xff] %v2290_v32  ;;  %v1832_v32 = vld [vmem:[#allocation8 + $0x108] sm:$0xff] }
 0x2d6   : > { %2355 = vst [vmem:[#allocation8 + $0x58] sm:$0xff] %v2291_v57  ;;  %v1833_v57 = vld [vmem:[#allocation8 + $0x110] sm:$0xff] }
 0x2d8   : > { %v2151_v2 = vpop.f32.mrb[44].mxu0 }
 0x2d9   : > { %v2292_v23 = vadd.f32 %v2151_v2, %v1811_v39  ;;  %v2153_v26 = vpop.f32.mrb[45].mxu0  ;;  %v1834_v2 = vld [vmem:[#allocation8 + $0x118] sm:$0xff] }
 0x2da   : > { %v2293_v36 = vadd.f32 %v2153_v26, %v1812_v45  ;;  %v2155_v49 = vpop.f32.mrb[46].mxu0 }
 0x2db   : > { %2356 = vst [vmem:[#allocation8 + $0x60] sm:$0xff] %v2292_v23  ;;  %v2294_v46 = vadd.f32 %v2155_v49, %v1813_v14  ;;  %v2157_v62 = vpop.f32.mrb[47].mxu0  ;;  %v1835_v49 = vld [vmem:[#allocation8 + $0x120] sm:$0xff] }
 0x2dc   : > { %2357 = vst [vmem:[#allocation8 + $0x68] sm:$0xff] %v2293_v36  ;;  %v2295_v40 = vadd.f32 %v2157_v62, %v1814_v20 }
 0x2dd   : > { %2358 = vst [vmem:[#allocation8 + $0x70] sm:$0xff] %v2294_v46  ;;  %v1836_v46 = vld [vmem:[#allocation8 + $0x128] sm:$0xff] }
 0x2de   : > { %2359 = vst [vmem:[#allocation8 + $0x78] sm:$0xff] %v2295_v40  ;;  %v1837_v40 = vld [vmem:[#allocation8 + $0x130] sm:$0xff] }
 0x2eb   : > { %v2161_v3 = vpop.f32.mrb[48].mxu0 }
 0x2ec   : > { %v2296_v11 = vadd.f32 %v2161_v3, %v1815_v16  ;;  %v2163_v19 = vpop.f32.mrb[49].mxu0  ;;  %v1838_v3 = vld [vmem:[#allocation8 + $0x138] sm:$0xff] }
 0x2ed   : > { %v2297_v4 = vadd.f32 %v2163_v19, %v1816_v47  ;;  %v2165_v55 = vpop.f32.mrb[50].mxu0 }
 0x2ee   : > { %2360 = vst [vmem:[#allocation8 + $0x80] sm:$0xff] %v2296_v11  ;;  %v2298_v58 = vadd.f32 %v2165_v55, %v1817_v53  ;;  %v2167_v6 = vpop.f32.mrb[51].mxu0  ;;  %v1839_v55 = vld [vmem:[#allocation8 + $0x140] sm:$0xff] }
 0x2ef   : > { %2361 = vst [vmem:[#allocation8 + $0x88] sm:$0xff] %v2297_v4  ;;  %v2299_v12 = vadd.f32 %v2167_v6, %v1818_v31 }
 0x2f0   : > { %2362 = vst [vmem:[#allocation8 + $0x90] sm:$0xff] %v2298_v58  ;;  %v1840_v58 = vld [vmem:[#allocation8 + $0x148] sm:$0xff] }
 0x2f1   : > { %2363 = vst [vmem:[#allocation8 + $0x98] sm:$0xff] %v2299_v12  ;;  %v1841_v12 = vld [vmem:[#allocation8 + $0x150] sm:$0xff] }
 0x2f3   : > { %v2171_v44 = vpop.f32.mrb[52].mxu0 }
 0x2f4   : > { %v2300_v34 = vadd.f32 %v2171_v44, %v1819_v10  ;;  %v2173_v9 = vpop.f32.mrb[53].mxu0  ;;  %v1842_v44 = vld [vmem:[#allocation8 + $0x158] sm:$0xff] }
 0x2f5   : > { %v2301_v27 = vadd.f32 %v2173_v9, %v1820_v51  ;;  %v2175_v28 = vpop.f32.mrb[54].mxu0 }
 0x2f6   : > { %2364 = vst [vmem:[#allocation8 + $0xa0] sm:$0xff] %v2300_v34  ;;  %v2302_v56 = vadd.f32 %v2175_v28, %v1821_v8  ;;  %v2177_v5 = vpop.f32.mrb[55].mxu0  ;;  %v1843_v28 = vld [vmem:[#allocation8 + $0x160] sm:$0xff] }
 0x2f7   : > { %2365 = vst [vmem:[#allocation8 + $0xa8] sm:$0xff] %v2301_v27  ;;  %v2303_v63 = vadd.f32 %v2177_v5, %v1822_v7 }
 0x2f8   : > { %2366 = vst [vmem:[#allocation8 + $0xb0] sm:$0xff] %v2302_v56  ;;  %v1844_v56 = vld [vmem:[#allocation8 + $0x168] sm:$0xff] }
 0x2f9   : > { %2367 = vst [vmem:[#allocation8 + $0xb8] sm:$0xff] %v2303_v63  ;;  %v1845_v63 = vld [vmem:[#allocation8 + $0x170] sm:$0xff] }
 0x308   : > { %v2181_v61 = vpop.f32.mrb[56].mxu0 }
 0x309   : > { %v2304_v48 = vadd.f32 %v2181_v61, %v1823_v29  ;;  %v2183_v52 = vpop.f32.mrb[57].mxu0  ;;  %v1846_v61 = vld [vmem:[#allocation8 + $0x178] sm:$0xff] }
 0x30a   : > { %v2305_v41 = vadd.f32 %v2183_v52, %v1824_v37  ;;  %v2185_v59 = vpop.f32.mrb[58].mxu0 }
 0x30b   : > { %2368 = vst [vmem:[#allocation8 + $0xc0] sm:$0xff] %v2304_v48  ;;  %v2306_v42 = vadd.f32 %v2185_v59, %v1825_v18  ;;  %v2187_v15 = vpop.f32.mrb[59].mxu0  ;;  %v1847_v59 = vld [vmem:[#allocation8 + $0x180] sm:$0xff] }
 0x30c   : > { %2369 = vst [vmem:[#allocation8 + $0xc8] sm:$0xff] %v2305_v41  ;;  %v2307_v0 = vadd.f32 %v2187_v15, %v1826_v30 }
 0x30d   : > { %2370 = vst [vmem:[#allocation8 + $0xd0] sm:$0xff] %v2306_v42  ;;  %v1848_v42 = vld [vmem:[#allocation8 + $0x188] sm:$0xff] }
 0x30e   : > { %2371 = vst [vmem:[#allocation8 + $0xd8] sm:$0xff] %v2307_v0  ;;  %v1849_v0 = vld [vmem:[#allocation8 + $0x190] sm:$0xff] }
 0x310   : > { %v2191_v25 = vpop.f32.mrb[60].mxu0 }
 0x311   : > { %v2308_v21 = vadd.f32 %v2191_v25, %v1827_v35  ;;  %v2193_v50 = vpop.f32.mrb[61].mxu0  ;;  %v1850_v25 = vld [vmem:[#allocation8 + $0x198] sm:$0xff] }
 0x312   : > { %v2309_v22 = vadd.f32 %v2193_v50, %v1828_v38  ;;  %v2195_v17 = vpop.f32.mrb[62].mxu0 }
 0x313   : > { %2372 = vst [vmem:[#allocation8 + $0xe0] sm:$0xff] %v2308_v21  ;;  %v2310_v43 = vadd.f32 %v2195_v17, %v1829_v54  ;;  %v2197_v1 = vpop.f32.mrb[63].mxu0  ;;  %v1851_v17 = vld [vmem:[#allocation8 + $0x1a0] sm:$0xff] }
 0x314   : > { %2373 = vst [vmem:[#allocation8 + $0xe8] sm:$0xff] %v2309_v22  ;;  %v2311_v13 = vadd.f32 %v2197_v1, %v1830_v60 }
 0x315   : > { %2374 = vst [vmem:[#allocation8 + $0xf0] sm:$0xff] %v2310_v43  ;;  %v1852_v43 = vld [vmem:[#allocation8 + $0x1a8] sm:$0xff] }
 0x316   : > { %2375 = vst [vmem:[#allocation8 + $0xf8] sm:$0xff] %v2311_v13  ;;  %v1853_v13 = vld [vmem:[#allocation8 + $0x1b0] sm:$0xff] }
 0x318   : > { %v2201_v24 = vpop.f32.mrb[64].mxu0 }
 0x319   : > { %v2312_v39 = vadd.f32 %v2201_v24, %v1831_v33  ;;  %v2203_v45 = vpop.f32.mrb[65].mxu0  ;;  %v1854_v24 = vld [vmem:[#allocation8 + $0x1b8] sm:$0xff] }
 0x31a   : > { %v2313_v14 = vadd.f32 %v2203_v45, %v1832_v32  ;;  %v2205_v23 = vpop.f32.mrb[66].mxu0 }
 0x31b   : > { %2376 = vst [vmem:[#allocation8 + $0x100] sm:$0xff] %v2312_v39  ;;  %v2314_v26 = vadd.f32 %v2205_v23, %v1833_v57  ;;  %v2207_v20 = vpop.f32.mrb[67].mxu0  ;;  %v1855_v23 = vld [vmem:[#allocation8 + $0x1c0] sm:$0xff] }
 0x31c   : > { %2377 = vst [vmem:[#allocation8 + $0x108] sm:$0xff] %v2313_v14  ;;  %v2315_v36 = vadd.f32 %v2207_v20, %v1834_v2 }
 0x31d   : > { %2378 = vst [vmem:[#allocation8 + $0x110] sm:$0xff] %v2314_v26  ;;  %v1856_v26 = vld [vmem:[#allocation8 + $0x1c8] sm:$0xff] }
 0x31e   : > { %2379 = vst [vmem:[#allocation8 + $0x118] sm:$0xff] %v2315_v36  ;;  %v1857_v36 = vld [vmem:[#allocation8 + $0x1d0] sm:$0xff] }
 0x320   : > { %v2211_v62 = vpop.f32.mrb[68].mxu0 }
 0x321   : > { %v2316_v16 = vadd.f32 %v2211_v62, %v1835_v49  ;;  %v2213_v47 = vpop.f32.mrb[69].mxu0  ;;  %v1858_v62 = vld [vmem:[#allocation8 + $0x1d8] sm:$0xff] }
 0x322   : > { %v2317_v53 = vadd.f32 %v2213_v47, %v1836_v46  ;;  %v2215_v11 = vpop.f32.mrb[70].mxu0 }
 0x323   : > { %2380 = vst [vmem:[#allocation8 + $0x120] sm:$0xff] %v2316_v16  ;;  %v2318_v19 = vadd.f32 %v2215_v11, %v1837_v40  ;;  %v2217_v31 = vpop.f32.mrb[71].mxu0  ;;  %v1859_v11 = vld [vmem:[#allocation8 + $0x1e0] sm:$0xff] }
 0x324   : > { %2381 = vst [vmem:[#allocation8 + $0x128] sm:$0xff] %v2317_v53  ;;  %v2319_v4 = vadd.f32 %v2217_v31, %v1838_v3 }
 0x325   : > { %2382 = vst [vmem:[#allocation8 + $0x130] sm:$0xff] %v2318_v19  ;;  %v1860_v19 = vld [vmem:[#allocation8 + $0x1e8] sm:$0xff] }
 0x326   : > { %2383 = vst [vmem:[#allocation8 + $0x138] sm:$0xff] %v2319_v4  ;;  %v1861_v4 = vld [vmem:[#allocation8 + $0x1f0] sm:$0xff] }
 0x328   : > { %v2221_v6 = vpop.f32.mrb[72].mxu0 }
 0x329   : > { %v2320_v10 = vadd.f32 %v2221_v6, %v1839_v55  ;;  %v2223_v51 = vpop.f32.mrb[73].mxu0  ;;  %v1862_v6 = vld [vmem:[#allocation8 + $0x1f8] sm:$0xff] }
 0x32a   : > { %v2321_v8 = vadd.f32 %v2223_v51, %v1840_v58  ;;  %v2225_v34 = vpop.f32.mrb[74].mxu0 }
 0x32b   : > { %2384 = vst [vmem:[#allocation8 + $0x140] sm:$0xff] %v2320_v10  ;;  %v2322_v9 = vadd.f32 %v2225_v34, %v1841_v12  ;;  %v2227_v7 = vpop.f32.mrb[75].mxu0 }
 0x32c   : > { %2385 = vst [vmem:[#allocation8 + $0x148] sm:$0xff] %v2321_v8  ;;  %v2323_v27 = vadd.f32 %v2227_v7, %v1842_v44 }
 0x32d   : > { %2386 = vst [vmem:[#allocation8 + $0x150] sm:$0xff] %v2322_v9 }
 0x32e   : > { %2387 = vst [vmem:[#allocation8 + $0x158] sm:$0xff] %v2323_v27 }
 0x330   : > { %v2231_v5 = vpop.f32.mrb[76].mxu0 }
 0x331   : > { %v2324_v29 = vadd.f32 %v2231_v5, %v1843_v28  ;;  %v2233_v37 = vpop.f32.mrb[77].mxu0 }
 0x332   : > { %v2325_v18 = vadd.f32 %v2233_v37, %v1844_v56  ;;  %v2235_v48 = vpop.f32.mrb[78].mxu0 }
 0x333   : > { %2388 = vst [vmem:[#allocation8 + $0x160] sm:$0xff] %v2324_v29  ;;  %v2326_v52 = vadd.f32 %v2235_v48, %v1845_v63  ;;  %v2237_v30 = vpop.f32.mrb[79].mxu0 }
 0x334   : > { %2389 = vst [vmem:[#allocation8 + $0x168] sm:$0xff] %v2325_v18  ;;  %v2327_v41 = vadd.f32 %v2237_v30, %v1846_v61 }
 0x335   : > { %2390 = vst [vmem:[#allocation8 + $0x170] sm:$0xff] %v2326_v52 }
 0x336   : > { %2391 = vst [vmem:[#allocation8 + $0x178] sm:$0xff] %v2327_v41 }
 0x338   : > { %v2241_v15 = vpop.f32.mrb[80].mxu0 }
 0x339   : > { %v2328_v35 = vadd.f32 %v2241_v15, %v1847_v59  ;;  %v2243_v38 = vpop.f32.mrb[81].mxu0 }
 0x33a   : > { %v2329_v54 = vadd.f32 %v2243_v38, %v1848_v42  ;;  %v2245_v21 = vpop.f32.mrb[82].mxu0 }
 0x33b   : > { %2392 = vst [vmem:[#allocation8 + $0x180] sm:$0xff] %v2328_v35  ;;  %v2330_v50 = vadd.f32 %v2245_v21, %v1849_v0  ;;  %v2247_v60 = vpop.f32.mrb[83].mxu0 }
 0x33c   : > { %2393 = vst [vmem:[#allocation8 + $0x188] sm:$0xff] %v2329_v54  ;;  %v2331_v22 = vadd.f32 %v2247_v60, %v1850_v25 }
 0x33d   : > { %2394 = vst [vmem:[#allocation8 + $0x190] sm:$0xff] %v2330_v50 }
 0x33e   : > { %2395 = vst [vmem:[#allocation8 + $0x198] sm:$0xff] %v2331_v22 }
 0x340   : > { %v2251_v1 = vpop.f32.mrb[84].mxu0 }
 0x341   : > { %v2332_v33 = vadd.f32 %v2251_v1, %v1851_v17  ;;  %v2253_v32 = vpop.f32.mrb[85].mxu0 }
 0x342   : > { %v2333_v57 = vadd.f32 %v2253_v32, %v1852_v43  ;;  %v2255_v39 = vpop.f32.mrb[86].mxu0 }
 0x343   : > { %2396 = vst [vmem:[#allocation8 + $0x1a0] sm:$0xff] %v2332_v33  ;;  %v2334_v45 = vadd.f32 %v2255_v39, %v1853_v13  ;;  %v2257_v2 = vpop.f32.mrb[87].mxu0 }
 0x344   : > { %2397 = vst [vmem:[#allocation8 + $0x1a8] sm:$0xff] %v2333_v57  ;;  %v2335_v14 = vadd.f32 %v2257_v2, %v1854_v24 }
 0x345   : > { %2398 = vst [vmem:[#allocation8 + $0x1b0] sm:$0xff] %v2334_v45 }
 0x346   : > { %2399 = vst [vmem:[#allocation8 + $0x1b8] sm:$0xff] %v2335_v14 }
 0x348   : > { %v2261_v20 = vpop.f32.mrb[88].mxu0 }
 0x349   : > { %v2336_v49 = vadd.f32 %v2261_v20, %v1855_v23  ;;  %v2263_v46 = vpop.f32.mrb[89].mxu0 }
 0x34a   : > { %v2337_v40 = vadd.f32 %v2263_v46, %v1856_v26  ;;  %v2265_v16 = vpop.f32.mrb[90].mxu0 }
 0x34b   : > { %2400 = vst [vmem:[#allocation8 + $0x1c0] sm:$0xff] %v2336_v49  ;;  %v2338_v47 = vadd.f32 %v2265_v16, %v1857_v36  ;;  %v2267_v3 = vpop.f32.mrb[91].mxu0 }
 0x34c   : > { %2401 = vst [vmem:[#allocation8 + $0x1c8] sm:$0xff] %v2337_v40  ;;  %v2339_v53 = vadd.f32 %v2267_v3, %v1858_v62 }
 0x34d   : > { %2402 = vst [vmem:[#allocation8 + $0x1d0] sm:$0xff] %v2338_v47 }
 0x34e   : > { %2403 = vst [vmem:[#allocation8 + $0x1d8] sm:$0xff] %v2339_v53 }
 0x350   : > { %v2271_v31 = vpop.f32.mrb[92].mxu0 }
 0x351   : > { %v2340_v55 = vadd.f32 %v2271_v31, %v1859_v11  ;;  %v2273_v58 = vpop.f32.mrb[93].mxu0 }
 0x352   : > { %v2341_v12 = vadd.f32 %v2273_v58, %v1860_v19  ;;  %v2275_v10 = vpop.f32.mrb[94].mxu0 }
 0x353   : > { %2404 = vst [vmem:[#allocation8 + $0x1e0] sm:$0xff] %v2340_v55  ;;  %v2342_v51 = vadd.f32 %v2275_v10, %v1861_v4  ;;  %v2277_v44 = vpop.f32.mrb[95].mxu0 }
 0x354   : > { %2405 = vst [vmem:[#allocation8 + $0x1e8] sm:$0xff] %v2341_v12  ;;  %v2343_v8 = vadd.f32 %v2277_v44, %v1862_v6 }
 0x355   : > { %2406 = vst [vmem:[#allocation8 + $0x1f0] sm:$0xff] %v2342_v51 }
 0x356   : > { %2407 = vst [vmem:[#allocation8 + $0x1f8] sm:$0xff] %v2343_v8 }
 0x357   : > { %3395 = shalt.err (!%p3392_p10)
}
 0x358   : > { %s3396_s23 = scalar_lea.hbm %s4436_s3, 8192 }
 0x359   : > { %p3397_p0 = scmp.ne.s32.totalorder %s4436_s3, %s3396_s23  ;;  %p3402_p13 = scmp.lt.u32.totalorder %s3396_s23, %s4436_s3 }
 0x35b   : > { %p3398_p8 = pnand %p3397_p0, %p2787_p11 }
 0x35d   : > { %p3399_p2 = pneg %p3398_p8 }
 0x35f   : > { %p3404_p3 = pnand %p3402_p13, %p3399_p2 }
 0x361   : > { %3407 = shalt.err (!%p3404_p3)
}
 0x362   : > { %s3477_s29 = smov 256   ;;  %s3478_s6 = smov 16  }
 0x363   : > { %2770 = dma.vmem_to_hbm [thread:$0]  (%p2787_p11), %s2419_s8, 8192, %s4436_s3, [#allocation4], %s3477_s29, %s3477_s29, %s3478_s6  }
 0x364   : > { %3441 = dma.done.wait (%p2787_p11), [#allocation4], 8192  }
 0x365   : > { %3443 = vsyncadd (%p2787_p11), [#allocation4], 4294959104 }
 0x366 PF: > { %s18_s17 = sadd.s32 1, %s3466_s17   ;;  %s4541_s12 = smov %s3450_s13 }
 0x367   : > { %p15_p5 = scmp.ge.s32.totalorder %s18_s17, 5   ;;  %s4542_s13 = smov %s3454_s14 }
 0x368   : > { %s4543_s14 = smov %s3543_s24  ;;  %s4544_s15 = smov %s3462_s16 }
 0x369   : > { %s4545_s16 = smov %s4547_s18  ;;  %17 = sbr.rel (!%p15_p5) target bundleno = 6 (0x6), region = 91 }
 0x370   :  { %2434 = vsyncpa [#allocation3], 1 }
 0x371   :  { %2436 = vsyncpa [#allocation3 + $0x1], 1 }
 0x372   :  { %2437 = vsyncpa [#allocation6], 1 }
 0x373   :  { %2439 = vsyncpa [#allocation6 + $0x1], 1 }
 0x374   :  { %2440 = vsyncpa [#allocation4], 1 }
 0x375   :  { %2442 = vsyncpa [#allocation4 + $0x1], 1 }

</bundles_post_ra>
